<compile_context>
chip_gen: v6e
topology: v6e:2x2x1
jax: 0.10.0
libtpu: 0.0.40
codegen_flags: <defaults>
</compile_context>

<pallas_src>
import numpy as np
import jax
import jax.numpy as jnp
from jax.experimental import pallas as pl
from jax.experimental.pallas import tpu as pltpu


# ----------------------------------------------------------------------------
# Deterministic construction of the motion-blur kernel (glue / parameter setup)
# ----------------------------------------------------------------------------
def _cubic_coeffs(f, A=-0.75):
    """OpenCV-style bicubic weights (a = -0.75) for taps at offsets -1,0,1,2."""
    w0 = ((A * (f + 1.0) - 5.0 * A) * (f + 1.0) + 8.0 * A) * (f + 1.0) - 4.0 * A
    w1 = ((A + 2.0) * f - (A + 3.0)) * f * f + 1.0
    w2 = ((A + 2.0) * (1.0 - f) - (A + 3.0)) * (1.0 - f) * (1.0 - f) + 1.0
    w3 = 1.0 - w0 - w1 - w2
    return np.array([w0, w1, w2, w3], dtype=np.float64)


def _invert_affine(M):
    M3 = np.vstack([M.astype(np.float64), [0.0, 0.0, 1.0]])
    return np.linalg.inv(M3)[:2, :]


def _warp_affine_cubic(src, M, dsize):
    """Minimal cv2.warpAffine(INTER_CUBIC, BORDER_CONSTANT=0) replacement."""
    # TODO(synk): cv2 uses fixed-point interpolation tables; this float version
    # may differ from OpenCV in the last few ulps.
    w_out, h_out = dsize
    Minv = _invert_affine(M)
    Hs, Ws = src.shape
    dst = np.zeros((h_out, w_out), dtype=np.float32)
    for yd in range(h_out):
        for xd in range(w_out):
            xs = Minv[0, 0] * xd + Minv[0, 1] * yd + Minv[0, 2]
            ys = Minv[1, 0] * xd + Minv[1, 1] * yd + Minv[1, 2]
            x0 = int(np.floor(xs))
            y0 = int(np.floor(ys))
            wx = _cubic_coeffs(xs - x0)
            wy = _cubic_coeffs(ys - y0)
            val = 0.0
            for i in range(-1, 3):
                yy = y0 + i
                for j in range(-1, 3):
                    xx = x0 + j
                    v = src[yy, xx] if (0 <= yy < Hs and 0 <= xx < Ws) else 0.0
                    val += wy[i + 1] * wx[j + 1] * v
            dst[yd, xd] = np.float32(val)
    return dst


def _motion_kernel(c, angle_deg):
    kern = np.ones((1, c), np.float32)
    angle = -np.pi * angle_deg / 180.0
    cos, sin = np.cos(angle), np.sin(angle)
    A = np.float32([[cos, -sin, 0.0], [sin, cos, 0.0]])
    sz2 = c // 2
    A[:, 2] = (sz2, sz2) - np.dot(A[:, :2], ((c - 1) * 0.5, 0.0))
    kern = _warp_affine_cubic(kern, A, (c, c))
    kern = kern / np.sum(kern)
    return kern.astype(np.float32)  # (c, c)


# ----------------------------------------------------------------------------
# Pallas kernel: depthwise c x c conv over pre-padded planes, strip-mined rows
# ----------------------------------------------------------------------------
def _make_blur_kernel(c, Hp, Wp, Ho, Wo, P, strips):
    """strips: static list of (row_start, rows) output-row strips."""

    def kernel(w_ref, x_ref, o_ref):
        # w_ref: (c*c,) f32 in SMEM (shared by all channels)
        # x_ref: (P, Hp, Wp) padded planes (f32 or bf16)
        # o_ref: (P, Ho, Wo) f32

        # Hoist ALL scalar weight reads into one batch so the LLO scheduler can
        # hide them off the vector critical path.
        ws = [w_ref[k] for k in range(c * c)]

        # TODO(synk): convert to lax.fori_loop over uniform strips if regalloc
        # ever shows cross-strip live-range growth; static slices are free.
        for (r0, rs) in strips:
            acc = None
            for kw in range(c):
                # One lane-shifted load per kw (shift < c lanes), reused by the
                # c kh taps, which are small sublane-offset slices of the slab.
                slab = x_ref[:, r0:r0 + rs + c - 1, kw:kw + Wo]
                slab = slab.astype(jnp.float32)
                for kh in range(c):
                    term = ws[kh * c + kw] * slab[:, kh:kh + rs, :]
                    acc = term if acc is None else acc + term
            # Folded epilogue: /255 -> clamp(0,1) -> *255 -> floor
            o_ref[:, r0:r0 + rs, :] = jnp.floor(jnp.clip(acc, 0.0, 255.0))

    return kernel


# ----------------------------------------------------------------------------
# Wrapper: reflect pad in XLA, block sizing, pallas_call
# ----------------------------------------------------------------------------
_BLOCK_BUDGET_BYTES = 24 << 20     # double-buffered in+out block footprint
_VMEM_LIMIT_BYTES = 40 << 20       # < v7x 64 MiB physical; < v5e/v6e 128 MiB
_ROW_STRIP = 16                    # output rows per in-kernel strip


def _ceil_to(x, m):
    return -(-x // m) * m


def _device_kind():
    try:
        return jax.devices()[0].device_kind.lower()
    except Exception:
        return ""


def _choose_planes_per_block(n, per_plane_bytes, budget_bytes, v7x):
    p = max(1, int(budget_bytes // max(per_plane_bytes, 1)))
    p = min(p, n)
    if v7x and n >= 2:
        p = min(p, n // 2)          # >= 2 grid steps so both v7x TCs get work
    p = max(1, p)
    while n % p:                    # uniform blocks, no ragged tail
        p -= 1
    if v7x and p > 1 and (n // p) % 2:
        # Prefer an even step count on v7x (equal work per TensorCore) if a
        # nearby divisor gives one without shrinking P by more than 2x.
        for q in range(p, max(p // 2, 1) - 1, -1):
            if n % q == 0 and (n // q) % 2 == 0:
                p = q
                break
    return p


def motion_blur_conv(x, w_flat, *, c):
    """x: (N, H, W) pixel-valued planes (0..255); w_flat: (c*c,) f32.

    Returns (N, Ho, Wo) f32 where Ho = H + 2*(c//2) - c, Wo likewise.
    """
    N, H, W = x.shape
    sz2 = c // 2
    assert H >= sz2 + 1 and W >= sz2 + 1, "image too small for reflect padding"

    # Reflect pad ONCE in the wrapper (XLA op); matches
    # F.pad(img, (sz2, sz2-1, sz2-1, sz2), 'reflect').
    xp = jnp.pad(jnp.asarray(x, jnp.float32),
                 ((0, 0), (sz2 - 1, sz2), (sz2, sz2 - 1)), mode="reflect")
    Hp, Wp = H + 2 * sz2 - 1, W + 2 * sz2 - 1
    Ho, Wo = Hp - c + 1, Wp - c + 1

    kind = _device_kind()
    is_v7x = "v7" in kind
    # bf16 input on v6e/v7x only (pixel values 0..255 are exact in bf16);
    # v5e has no bf16 VALU, keep f32 there.
    in_dtype = jnp.bfloat16 if (("v6" in kind) or ("v7" in kind)) else jnp.float32
    xp = xp.astype(in_dtype)

    # Per-plane VMEM footprint with layout padding (lanes -> 128, sublanes ->
    # 8 for f32 / 16 for bf16); BlockSpec double-buffers both in and out.
    in_item = jnp.dtype(in_dtype).itemsize
    sub = 16 if in_item == 2 else 8
    in_plane = in_item * _ceil_to(Hp, sub) * _ceil_to(Wp, 128)
    out_plane = 4 * _ceil_to(Ho, 8) * _ceil_to(Wo, 128)
    per_plane = 2 * (in_plane + out_plane)
    P = _choose_planes_per_block(N, per_plane, _BLOCK_BUDGET_BYTES, is_v7x)

    # Static row strips: keeps the f32 accumulator register-resident.
    rs0 = Ho if Ho <= 2 * _ROW_STRIP else _ROW_STRIP
    strips = []
    r0 = 0
    while r0 < Ho:
        rs = min(rs0, Ho - r0)
        strips.append((r0, rs))
        r0 += rs

    return pl.pallas_call(
        _make_blur_kernel(c, Hp, Wp, Ho, Wo, P, strips),
        out_shape=jax.ShapeDtypeStruct((N, Ho, Wo), jnp.float32),
        grid=(N // P,),
        in_specs=[
            pl.BlockSpec(memory_space=pltpu.MemorySpace.SMEM),   # (c*c,) weights
            pl.BlockSpec((P, Hp, Wp), lambda i: (i, 0, 0)),      # P padded planes
        ],
        out_specs=pl.BlockSpec((P, Ho, Wo), lambda i: (i, 0, 0)),
        compiler_params=pltpu.CompilerParams(
            dimension_semantics=("parallel",),
            vmem_limit_bytes=_VMEM_LIMIT_BYTES),
    )(w_flat, xp)


# ----------------------------------------------------------------------------
# Module analogue
# ----------------------------------------------------------------------------
class MotionBlurPallas:
    def __init__(self, nIn=1, rng=None):
        self.rng = np.random.default_rng(0) if rng is None else rng
        self.c = [4, 5, 6]
        self.channels = nIn
        self.last_c = None
        self.last_kern = None

    def forward(self, img, mag=-1, prob=1.0):
        if self.rng.uniform(0, 1) > prob:
            return img
        if mag < 0 or mag >= len(self.c):
            index = int(self.rng.integers(0, len(self.c)))
        else:
            index = mag
        c = self.c[index]
        angle_deg = float(self.rng.uniform(-45, 45))
        kern2d = _motion_kernel(c, angle_deg)     # (c, c); identical per channel
        self.last_c, self.last_kern = c, kern2d

        B, C, H, W = img.shape
        x = jnp.asarray(img, jnp.float32).reshape(B * C, H, W)   # free reshape
        out = motion_blur_conv(
            x, jnp.asarray(kern2d.reshape(-1), jnp.float32), c=c)
        Ho, Wo = out.shape[1], out.shape[2]
        # NOTE: /255 -> conv -> clamp(0,1)*255 -> floor is folded to
        # conv -> floor(clip(., 0, 255)) in the kernel (equal up to fp rounding).
        return out.reshape(B, C, Ho, Wo)                          # free reshape


# Pure-JAX reference with the original op order (used only for a loose check).
def _reference_motion_blur(img, kern2d, c):
    sz2 = c // 2
    x = img.astype(jnp.float32) / 255.0
    xp = jnp.pad(x, ((0, 0), (0, 0), (sz2 - 1, sz2), (sz2, sz2 - 1)), mode="reflect")
    Hp, Wp = xp.shape[2], xp.shape[3]
    Ho, Wo = Hp - c + 1, Wp - c + 1
    acc = jnp.zeros(xp.shape[:2] + (Ho, Wo), jnp.float32)
    for kh in range(c):
        for kw in range(c):
            acc = acc + float(kern2d[kh, kw]) * xp[:, :, kh:kh + Ho, kw:kw + Wo]
    return jnp.floor(jnp.clip(acc, 0.0, 1.0) * 255.0)


if __name__ == "__main__":
    key = jax.random.PRNGKey(0)
    B, C, H, W = 2, 4, 16, 16
    # integer pixel values in [0, 255] (exact in both f32 and bf16), NCHW
    img = jnp.floor(jax.random.uniform(key, (B, C, H, W), dtype=jnp.float32) * 256.0)

    blur = MotionBlurPallas(nIn=C, rng=np.random.default_rng(0))
    out = blur.forward(img, mag=0, prob=1.0)   # mag=0 -> c=4 -> output 16x16
    out = jax.block_until_ready(out)

    assert out.shape == (B, C, H, W), out.shape
    assert out.dtype == jnp.float32
    assert bool(jnp.all(out >= 0.0)) and bool(jnp.all(out <= 255.0))

    # Loose parity check vs the original op order (floor can flip by 1 at
    # exact-integer boundaries because of the folded /255*255).
    ref = _reference_motion_blur(img, blur.last_kern, blur.last_c)
    ref = jax.block_until_ready(ref)
    assert float(jnp.max(jnp.abs(out - ref))) <= 1.0

    print("KERNEL_OK")
</pallas_src>

<mosaic_0001>
module attributes {stable_mosaic.version = 11 : i64} {
  func.func @kernel(%arg0: i32, %arg1: memref<16xf32, #tpu.memory_space<smem>>, %arg2: memref<8x19x19xf32, #tpu.memory_space<vmem>>, %arg3: memref<8x16x16xf32, #tpu.memory_space<vmem>>) attributes {dimension_semantics = [#tpu.dimension_semantics<parallel>], iteration_bounds = array<i64: 1>, scalar_prefetch = 0 : i64, scratch_operands = 0 : i64, tpu.core_type = #tpu.core_type<tc>, window_params = [{transform_indices = @transform_0, window_bounds = array<i64: 16>}, {transform_indices = @transform_1, window_bounds = array<i64: 8, 19, 19>}, {transform_indices = @transform_2, window_bounds = array<i64: 8, 16, 16>}]} {
    %c0 = arith.constant 0 : index
    %0 = memref.load %arg1[%c0] : memref<16xf32, #tpu.memory_space<smem>>
    %c1 = arith.constant 1 : index
    %1 = memref.load %arg1[%c1] : memref<16xf32, #tpu.memory_space<smem>>
    %c2 = arith.constant 2 : index
    %2 = memref.load %arg1[%c2] : memref<16xf32, #tpu.memory_space<smem>>
    %c3 = arith.constant 3 : index
    %3 = memref.load %arg1[%c3] : memref<16xf32, #tpu.memory_space<smem>>
    %c4 = arith.constant 4 : index
    %4 = memref.load %arg1[%c4] : memref<16xf32, #tpu.memory_space<smem>>
    %c5 = arith.constant 5 : index
    %5 = memref.load %arg1[%c5] : memref<16xf32, #tpu.memory_space<smem>>
    %c6 = arith.constant 6 : index
    %6 = memref.load %arg1[%c6] : memref<16xf32, #tpu.memory_space<smem>>
    %c7 = arith.constant 7 : index
    %7 = memref.load %arg1[%c7] : memref<16xf32, #tpu.memory_space<smem>>
    %c8 = arith.constant 8 : index
    %8 = memref.load %arg1[%c8] : memref<16xf32, #tpu.memory_space<smem>>
    %c9 = arith.constant 9 : index
    %9 = memref.load %arg1[%c9] : memref<16xf32, #tpu.memory_space<smem>>
    %c10 = arith.constant 10 : index
    %10 = memref.load %arg1[%c10] : memref<16xf32, #tpu.memory_space<smem>>
    %c11 = arith.constant 11 : index
    %11 = memref.load %arg1[%c11] : memref<16xf32, #tpu.memory_space<smem>>
    %c12 = arith.constant 12 : index
    %12 = memref.load %arg1[%c12] : memref<16xf32, #tpu.memory_space<smem>>
    %c13 = arith.constant 13 : index
    %13 = memref.load %arg1[%c13] : memref<16xf32, #tpu.memory_space<smem>>
    %c14 = arith.constant 14 : index
    %14 = memref.load %arg1[%c14] : memref<16xf32, #tpu.memory_space<smem>>
    %c15 = arith.constant 15 : index
    %15 = memref.load %arg1[%c15] : memref<16xf32, #tpu.memory_space<smem>>
    %c0_0 = arith.constant 0 : index
    %c0_1 = arith.constant 0 : index
    %c0_2 = arith.constant 0 : index
    %16 = vector.load %arg2[%c0_0, %c0_1, %c0_2] : memref<8x19x19xf32, #tpu.memory_space<vmem>>, vector<8x19x16xf32>
    %17 = vector.extract_strided_slice %16 {offsets = [0, 0, 0], sizes = [8, 16, 16], strides = [1, 1, 1]} : vector<8x19x16xf32> to vector<8x16x16xf32>
    %18 = vector.broadcast %0 : f32 to vector<8x16x16xf32>
    %19 = arith.mulf %18, %17 : vector<8x16x16xf32>
    %20 = vector.extract_strided_slice %16 {offsets = [0, 1, 0], sizes = [8, 16, 16], strides = [1, 1, 1]} : vector<8x19x16xf32> to vector<8x16x16xf32>
    %21 = vector.broadcast %4 : f32 to vector<8x16x16xf32>
    %22 = arith.mulf %21, %20 : vector<8x16x16xf32>
    %23 = arith.addf %19, %22 : vector<8x16x16xf32>
    %24 = vector.extract_strided_slice %16 {offsets = [0, 2, 0], sizes = [8, 16, 16], strides = [1, 1, 1]} : vector<8x19x16xf32> to vector<8x16x16xf32>
    %25 = vector.broadcast %8 : f32 to vector<8x16x16xf32>
    %26 = arith.mulf %25, %24 : vector<8x16x16xf32>
    %27 = arith.addf %23, %26 : vector<8x16x16xf32>
    %28 = vector.extract_strided_slice %16 {offsets = [0, 3, 0], sizes = [8, 16, 16], strides = [1, 1, 1]} : vector<8x19x16xf32> to vector<8x16x16xf32>
    %29 = vector.broadcast %12 : f32 to vector<8x16x16xf32>
    %30 = arith.mulf %29, %28 : vector<8x16x16xf32>
    %31 = arith.addf %27, %30 : vector<8x16x16xf32>
    %c0_3 = arith.constant 0 : index
    %c0_4 = arith.constant 0 : index
    %c1_5 = arith.constant 1 : index
    %32 = vector.load %arg2[%c0_3, %c0_4, %c1_5] : memref<8x19x19xf32, #tpu.memory_space<vmem>>, vector<8x19x16xf32>
    %33 = vector.extract_strided_slice %32 {offsets = [0, 0, 0], sizes = [8, 16, 16], strides = [1, 1, 1]} : vector<8x19x16xf32> to vector<8x16x16xf32>
    %34 = vector.broadcast %1 : f32 to vector<8x16x16xf32>
    %35 = arith.mulf %34, %33 : vector<8x16x16xf32>
    %36 = arith.addf %31, %35 : vector<8x16x16xf32>
    %37 = vector.extract_strided_slice %32 {offsets = [0, 1, 0], sizes = [8, 16, 16], strides = [1, 1, 1]} : vector<8x19x16xf32> to vector<8x16x16xf32>
    %38 = vector.broadcast %5 : f32 to vector<8x16x16xf32>
    %39 = arith.mulf %38, %37 : vector<8x16x16xf32>
    %40 = arith.addf %36, %39 : vector<8x16x16xf32>
    %41 = vector.extract_strided_slice %32 {offsets = [0, 2, 0], sizes = [8, 16, 16], strides = [1, 1, 1]} : vector<8x19x16xf32> to vector<8x16x16xf32>
    %42 = vector.broadcast %9 : f32 to vector<8x16x16xf32>
    %43 = arith.mulf %42, %41 : vector<8x16x16xf32>
    %44 = arith.addf %40, %43 : vector<8x16x16xf32>
    %45 = vector.extract_strided_slice %32 {offsets = [0, 3, 0], sizes = [8, 16, 16], strides = [1, 1, 1]} : vector<8x19x16xf32> to vector<8x16x16xf32>
    %46 = vector.broadcast %13 : f32 to vector<8x16x16xf32>
    %47 = arith.mulf %46, %45 : vector<8x16x16xf32>
    %48 = arith.addf %44, %47 : vector<8x16x16xf32>
    %c0_6 = arith.constant 0 : index
    %c0_7 = arith.constant 0 : index
    %c2_8 = arith.constant 2 : index
    %49 = vector.load %arg2[%c0_6, %c0_7, %c2_8] : memref<8x19x19xf32, #tpu.memory_space<vmem>>, vector<8x19x16xf32>
    %50 = vector.extract_strided_slice %49 {offsets = [0, 0, 0], sizes = [8, 16, 16], strides = [1, 1, 1]} : vector<8x19x16xf32> to vector<8x16x16xf32>
    %51 = vector.broadcast %2 : f32 to vector<8x16x16xf32>
    %52 = arith.mulf %51, %50 : vector<8x16x16xf32>
    %53 = arith.addf %48, %52 : vector<8x16x16xf32>
    %54 = vector.extract_strided_slice %49 {offsets = [0, 1, 0], sizes = [8, 16, 16], strides = [1, 1, 1]} : vector<8x19x16xf32> to vector<8x16x16xf32>
    %55 = vector.broadcast %6 : f32 to vector<8x16x16xf32>
    %56 = arith.mulf %55, %54 : vector<8x16x16xf32>
    %57 = arith.addf %53, %56 : vector<8x16x16xf32>
    %58 = vector.extract_strided_slice %49 {offsets = [0, 2, 0], sizes = [8, 16, 16], strides = [1, 1, 1]} : vector<8x19x16xf32> to vector<8x16x16xf32>
    %59 = vector.broadcast %10 : f32 to vector<8x16x16xf32>
    %60 = arith.mulf %59, %58 : vector<8x16x16xf32>
    %61 = arith.addf %57, %60 : vector<8x16x16xf32>
    %62 = vector.extract_strided_slice %49 {offsets = [0, 3, 0], sizes = [8, 16, 16], strides = [1, 1, 1]} : vector<8x19x16xf32> to vector<8x16x16xf32>
    %63 = vector.broadcast %14 : f32 to vector<8x16x16xf32>
    %64 = arith.mulf %63, %62 : vector<8x16x16xf32>
    %65 = arith.addf %61, %64 : vector<8x16x16xf32>
    %c0_9 = arith.constant 0 : index
    %c0_10 = arith.constant 0 : index
    %c3_11 = arith.constant 3 : index
    %66 = vector.load %arg2[%c0_9, %c0_10, %c3_11] : memref<8x19x19xf32, #tpu.memory_space<vmem>>, vector<8x19x16xf32>
    %67 = vector.extract_strided_slice %66 {offsets = [0, 0, 0], sizes = [8, 16, 16], strides = [1, 1, 1]} : vector<8x19x16xf32> to vector<8x16x16xf32>
    %68 = vector.broadcast %3 : f32 to vector<8x16x16xf32>
    %69 = arith.mulf %68, %67 : vector<8x16x16xf32>
    %70 = arith.addf %65, %69 : vector<8x16x16xf32>
    %71 = vector.extract_strided_slice %66 {offsets = [0, 1, 0], sizes = [8, 16, 16], strides = [1, 1, 1]} : vector<8x19x16xf32> to vector<8x16x16xf32>
    %72 = vector.broadcast %7 : f32 to vector<8x16x16xf32>
    %73 = arith.mulf %72, %71 : vector<8x16x16xf32>
    %74 = arith.addf %70, %73 : vector<8x16x16xf32>
    %75 = vector.extract_strided_slice %66 {offsets = [0, 2, 0], sizes = [8, 16, 16], strides = [1, 1, 1]} : vector<8x19x16xf32> to vector<8x16x16xf32>
    %76 = vector.broadcast %11 : f32 to vector<8x16x16xf32>
    %77 = arith.mulf %76, %75 : vector<8x16x16xf32>
    %78 = arith.addf %74, %77 : vector<8x16x16xf32>
    %79 = vector.extract_strided_slice %66 {offsets = [0, 3, 0], sizes = [8, 16, 16], strides = [1, 1, 1]} : vector<8x19x16xf32> to vector<8x16x16xf32>
    %80 = vector.broadcast %15 : f32 to vector<8x16x16xf32>
    %81 = arith.mulf %80, %79 : vector<8x16x16xf32>
    %82 = arith.addf %78, %81 : vector<8x16x16xf32>
    %cst = arith.constant 0.000000e+00 : f32
    %cst_12 = arith.constant 2.550000e+02 : f32
    %83 = vector.broadcast %cst : f32 to vector<8x16x16xf32>
    %84 = arith.maximumf %83, %82 : vector<8x16x16xf32>
    %85 = vector.broadcast %cst_12 : f32 to vector<8x16x16xf32>
    %86 = arith.minimumf %85, %84 : vector<8x16x16xf32>
    %87 = math.floor %86 : vector<8x16x16xf32>
    %c0_13 = arith.constant 0 : index
    %c0_14 = arith.constant 0 : index
    %c0_15 = arith.constant 0 : index
    %88 = vector.load %arg3[%c0_13, %c0_14, %c0_15] : memref<8x16x16xf32, #tpu.memory_space<vmem>>, vector<8x16x16xf32>
    tpu.vector_store %arg3[%c0_13, %c0_14, %c0_15], %87 {strides = array<i32>} : memref<8x16x16xf32, #tpu.memory_space<vmem>>, vector<8x16x16xf32>,
    return
  }
  func.func @transform_0(%arg0: i32) -> i32 {
    %c0_i32 = arith.constant 0 : i32
    %c0_i32_0 = arith.constant 0 : i32
    return %c0_i32 : i32
  }
  func.func @transform_1(%arg0: i32) -> (i32, i32, i32) {
    %c0_i32 = arith.constant 0 : i32
    %c0_i32_0 = arith.constant 0 : i32
    %c0_i32_1 = arith.constant 0 : i32
    return %arg0, %c0_i32, %c0_i32_0 : i32, i32, i32
  }
  func.func @transform_2(%arg0: i32) -> (i32, i32, i32) {
    %c0_i32 = arith.constant 0 : i32
    %c0_i32_0 = arith.constant 0 : i32
    %c0_i32_1 = arith.constant 0 : i32
    return %arg0, %c0_i32, %c0_i32_0 : i32, i32, i32
  }
}

</mosaic_0001>

<bundles_post_ra>
// kernel: tpu_custom_call.1
= control target key start
LH: loop header
LB: loop body
LE: loop exit
PB: predicated region body
PF: predicated region fallthrough
CT: control target
= control target key end

     0   :  { %7 = vsyncpa [#allocation4], 0  ;;  %s4462_s0 = inlined_call_operand.vmem [shape: f32[16], index: 0, kind: input, shape index: {}]   ;;  %s4463_s1 = inlined_call_operand.vmem [shape: f32[8,19,19], index: 1, kind: input, shape index: {}]   ;;  %s4464_s2 = inlined_call_operand.hbm [shape: f32[8,16,16], index: 2, kind: output, shape index: {}]  }
   0x1   :  { %8 = vsyncpa [#allocation3], 0  ;;  %s15_s11 = sshll.u32 %s4462_s0, 4  ;;  %s16_s11 = int_to_ptr.vmem [resolvable:$true] %s15_s11 }
   0x2   :  { %s2268_s12 = scalar_lea.vmem %s16_s11, 16  ;;  %p2273_p1 = scmp.lt.s32.totalorder %s16_s11, %s16_s11 }
   0x3   :  { %p2269_p0 = scmp.ne.s32.totalorder %s16_s11, %s2268_s12  ;;  %p2274_p2 = scmp.lt.s32.totalorder %s2268_s12, %s2268_s12 }
   0x5   :  { %p2275_p3 = por %p2274_p2, %p2273_p1 }
   0x7   :  { %p2276_p4 = pnand %p2275_p3, %p2269_p0 }
   0x9   :  { %2279 = shalt.err (!%p2276_p4)
}
   0xa   :  { %s2304_s13 = smov [#allocation2]  }
   0xb   :  { %18 = dma.vmem_to_smem %s16_s11, 16, %s2304_s13, [#allocation4]  }
   0xc   :  { %2300 = dma.done.wait [#allocation4], 16  }
   0xd   :  { %2301 = vsyncadd [#allocation4], 4294967280 }
   0xe   :  { %24 = sfence }
   0xf   :  { %s2198_s14 = sld [smem:[#allocation2 + $0x1]]  ;;  %v2332_v0 = vld [vmem:[%s4463_s1 + $0x18] sm:$0xff]  ;;  %v2337_v1 = vld [vmem:[%s4463_s1] sm:$0xff]  ;;  %v2347_v4 = vld [vmem:[%s4463_s1 + $0x8] sm:$0xff]  ;;  %s2305_s22 = smov 127   ;;  %vm131_vm0 = vcmask 1046528  }
  0x10   :  { %v2342_v3 = vld [vmem:[%s4463_s1 + $0x20] sm:$0xff]  ;;  %v2358_v9 = vld [vmem:[%s4463_s1 + $0x38] sm:$0xff]  ;;  %v2363_v10 = vld [vmem:[%s4463_s1 + $0x30] sm:$0xff]  ;;  %s2202_s7 = sld [smem:[#allocation2 + $0x5]]  ;;  %vm253_vm1 = vcmask 1045504   ;;  %vm375_vm2 = vcmask 1044480  }
  0x11   :  { %v2372_v13 = vld [vmem:[%s4463_s1 + $0x50] sm:$0xff]  ;;  %v2377_v14 = vld [vmem:[%s4463_s1 + $0x48] sm:$0xff]  ;;  %v2391_v18 = vld [vmem:[%s4463_s1 + $0x60] sm:$0xff]  ;;  %s2206_s6 = sld [smem:[#allocation2 + $0x9]]  ;;  %s2306_s11 = smov 126   ;;  %vm2164_vm3 = vcmask 130048  }
  0x12   :  { %v2386_v17 = vld [vmem:[%s4463_s1 + $0x68] sm:$0xff]  ;;  %v2400_v21 = vld [vmem:[%s4463_s1 + $0x80] sm:$0xff]  ;;  %v2405_v22 = vld [vmem:[%s4463_s1 + $0x78] sm:$0xff]  ;;  %s2210_s9 = sld [smem:[#allocation2 + $0xd]] }
  0x13   :  { %v2414_v25 = vld [vmem:[%s4463_s1 + $0x98] sm:$0xff]  ;;  %v2419_v26 = vld [vmem:[%s4463_s1 + $0x90] sm:$0xff]  ;;  %v2440_v32 = vld [vmem:[%s4463_s1 + $0xa8] sm:$0xff]  ;;  %s2199_s10 = sld [smem:[#allocation2 + $0x2]] }
  0x14   :  { %v2424_v27 = vld [vmem:[%s4463_s1 + $0x10] sm:$0x7]  ;;  %v2451_v36 = vld [vmem:[%s4463_s1 + $0x28] sm:$0x7]  ;;  %v2466_v45 = vld [vmem:[%s4463_s1 + $0x40] sm:$0x7] }
  0x15   :  { %v448_v2 = vstv %s2198_s14  ;;  %v2435_v31 = vld [vmem:[%s4463_s1 + $0xb0] sm:$0xff]  ;;  %v2481_v54 = vld [vmem:[%s4463_s1 + $0x58] sm:$0x7]  ;;  %s2207_s12 = sld [smem:[#allocation2 + $0xa]] }
  0x16   :  { %v451_v5 = vmul.f32 %v448_v2, %v2332_v0  ;;  %v449_v6 = vmul.f32 %v448_v2, %v2337_v1  ;;  %v452_v7 = vmul.f32 %v448_v2, %v2342_v3  ;;  %v450_v8 = vmul.f32 %v448_v2, %v2347_v4  ;;  %v2496_v63 = vld [vmem:[%s4463_s1 + $0x70] sm:$0x7]  ;;  %s2201_s13 = sld [smem:[#allocation2 + $0x4]] }
  0x17   :  { %v454_v11 = vmul.f32 %v448_v2, %v2358_v9  ;;  %v453_v12 = vmul.f32 %v448_v2, %v2363_v10  ;;  %v456_v15 = vmul.f32 %v448_v2, %v2372_v13  ;;  %v455_v16 = vmul.f32 %v448_v2, %v2377_v14  ;;  %s2205_s14 = sld [smem:[#allocation2 + $0x8]] }
  0x18   :  { %485 = vrot.lane.b32.xlu1 %v451_v5, %s2305_s22  ;;  %481 = vrot.lane.b32.xlu0 %v449_v6, %s2305_s22  ;;  %v458_v19 = vmul.f32 %v448_v2, %v2386_v17  ;;  %v457_v20 = vmul.f32 %v448_v2, %v2391_v18  ;;  %v460_v23 = vmul.f32 %v448_v2, %v2400_v21  ;;  %v2426_v28 = vstv %s2202_s7  ;;  %s2901_s15 = sld [smem:[#allocation2 + $0xc]] }
  0x19   :  { %v459_v24 = vmul.f32 %v448_v2, %v2405_v22  ;;  %v462_v29 = vmul.f32 %v448_v2, %v2414_v25  ;;  %v461_v30 = vmul.f32 %v448_v2, %v2419_v26  ;;  %v547_v33 = vmul.f32 %v2426_v28, %v2347_v4  ;;  %s2927_s16 = sld [smem:[#allocation2]] }
  0x1a   :  { %v548_v34 = vmul.f32 %v2426_v28, %v2424_v27  ;;  %v546_v35 = vmul.f32 %v2426_v28, %v2337_v1  ;;  %v464_v37 = vmul.f32 %v448_v2, %v2435_v31  ;;  %v463_v38 = vmul.f32 %v448_v2, %v2440_v32  ;;  %s3059_s23 = sld [smem:[#allocation2 + $0xe]] }
  0x1b   :  { %v550_v39 = vmul.f32 %v2426_v28, %v2342_v3  ;;  %v551_v40 = vmul.f32 %v2426_v28, %v2451_v36  ;;  %v595_v41 = vrot.slane %v547_v33, 1  ;;  %v549_v44 = vmul.f32 %v2426_v28, %v2332_v0  ;;  %s4040_s27 = sld [smem:[#allocation2 + $0xf]] }
  0x1c   :  { %487 = vrot.lane.b32.xlu1 %v452_v7, %s2305_s22  ;;  %483 = vrot.lane.b32.xlu0 %v450_v8, %s2305_s22  ;;  %v597_v42 = vrot.slane %v548_v34, 1  ;;  %v594_v43 = vrot.slane %v546_v35, 1  ;;  %v553_v48 = vmul.f32 %v2426_v28, %v2358_v9  ;;  %v554_v49 = vmul.f32 %v2426_v28, %v2466_v45  ;;  %v2526_v35 = vld [vmem:[%s4463_s1 + $0xa0] sm:$0x7] }
  0x1d   :  { %v600_v46 = vrot.slane %v550_v39, 1  ;;  %v602_v47 = vrot.slane %v551_v40, 1  ;;  %v599_v52 = vrot.slane %v549_v44, 1  ;;  %v552_v53 = vmul.f32 %v2426_v28, %v2363_v10 }
  0x1e   :  { %v598_v50 = vsel %vm131_vm0, %v595_v41, %v597_v42  ;;  %v596_v51 = vsel %vm131_vm0, %v594_v43, %v595_v41  ;;  %v605_v55 = vrot.slane %v553_v48, 1  ;;  %v607_v56 = vrot.slane %v554_v49, 1 }
  0x1f   :  { %v556_v57 = vmul.f32 %v2426_v28, %v2372_v13  ;;  %v557_v58 = vmul.f32 %v2426_v28, %v2481_v54  ;;  %v603_v59 = vsel %vm131_vm0, %v600_v46, %v602_v47  ;;  %v601_v60 = vsel %vm131_vm0, %v599_v52, %v600_v46  ;;  %v2541_v46 = vld [vmem:[%s4463_s1 + $0xb8] sm:$0x7] }
  0x20   :  { %491 = vrot.lane.b32.xlu1 %v454_v11, %s2305_s22  ;;  %489 = vrot.lane.b32.xlu0 %v453_v12, %s2305_s22  ;;  %v604_v61 = vrot.slane %v552_v53, 1  ;;  %v555_v62 = vmul.f32 %v2426_v28, %v2377_v14  ;;  %v559_v6 = vmul.f32 %v2426_v28, %v2386_v17  ;;  %v560_v7 = vmul.f32 %v2426_v28, %v2496_v63 }
  0x21   :  { %v610_v2 = vrot.slane %v556_v57, 1  ;;  %v612_v5 = vrot.slane %v557_v58, 1  ;;  %v608_v8 = vsel %vm131_vm0, %v605_v55, %v607_v56  ;;  %v561_v34 = vmul.f32 %v2426_v28, %v2405_v22 }
  0x22   :  { %v606_v11 = vsel %vm131_vm0, %v604_v61, %v605_v55  ;;  %v609_v12 = vrot.slane %v555_v62, 1  ;;  %v566_v40 = vmul.f32 %v2426_v28, %v2526_v35  ;;  %v564_v44 = vmul.f32 %v2426_v28, %v2419_v26 }
  0x23   :  { %v619_v43 = vrot.slane %v561_v34, 1  ;;  %v568_v49 = vmul.f32 %v2426_v28, %v2435_v31  ;;  %v2553_v56 = vstv %s2206_s6 }
  0x24   :  { %495 = vrot.lane.b32.xlu1 %v456_v15, %s2305_s22  ;;  %493 = vrot.lane.b32.xlu0 %v455_v16, %s2305_s22  ;;  %v558_v15 = vmul.f32 %v2426_v28, %v2391_v18  ;;  %v2511_v16 = vld [vmem:[%s4463_s1 + $0x88] sm:$0x7]  ;;  %v627_v48 = vrot.slane %v566_v40, 1  ;;  %v624_v55 = vrot.slane %v564_v44, 1  ;;  %v701_v62 = vmul.f32 %v2553_v56, %v2424_v27 }
  0x25   :  { %v563_v33 = vmul.f32 %v2426_v28, %v2511_v16  ;;  %v630_v58 = vrot.slane %v568_v49, 1  ;;  %v710_v44 = vmul.f32 %v2553_v56, %v2481_v54 }
  0x27   :  { %v622_v42 = vrot.slane %v563_v33, 1 }
  0x28   :  { %499 = vrot.lane.b32.xlu1 %v458_v19, %s2305_s22  ;;  %497 = vrot.lane.b32.xlu0 %v457_v20, %s2305_s22  ;;  %v613_v19 = vsel %vm131_vm0, %v610_v2, %v612_v5  ;;  %v615_v20 = vrot.slane %v559_v6, 1  ;;  %v703_v5 = vmul.f32 %v2553_v56, %v2342_v3 }
  0x2c   :  { %503 = vrot.lane.b32.xlu1 %v460_v23, %s2305_s22  ;;  %501 = vrot.lane.b32.xlu0 %v459_v24, %s2305_s22  ;;  %v617_v23 = vrot.slane %v560_v7, 1  ;;  %v562_v24 = vmul.f32 %v2426_v28, %v2400_v21 }
  0x2e   :  { %v620_v39 = vrot.slane %v562_v24, 1  ;;  %v706_v24 = vmul.f32 %v2553_v56, %v2358_v9 }
  0x30   :  { %507 = vrot.lane.b32.xlu1 %v462_v29, %s2305_s22  ;;  %505 = vrot.lane.b32.xlu0 %v461_v30, %s2305_s22  ;;  %v611_v29 = vsel %vm131_vm0, %v609_v12, %v610_v2  ;;  %v614_v30 = vrot.slane %v558_v15, 1  ;;  %v623_v52 = vsel %vm131_vm0, %v620_v39, %v622_v42  ;;  %v621_v53 = vsel %vm131_vm0, %v619_v43, %v620_v39 }
  0x31   :  { %v699_v2 = vmul.f32 %v2553_v56, %v2337_v1  ;;  %v750_v12 = vrot.slane %v701_v62, 2  ;;  %v758_v39 = vrot.slane %v706_v24, 2  ;;  %v721_v24 = vmul.f32 %v2553_v56, %v2435_v31 }
  0x32   :  { %v616_v41 = vsel %vm131_vm0, %v614_v30, %v615_v20 }
  0x33   :  { %v747_v15 = vrot.slane %v699_v2, 2 }
  0x34   :  { %511 = vrot.lane.b32.xlu1 %v464_v37, %s2305_s22  ;;  %509 = vrot.lane.b32.xlu0 %v463_v38, %s2305_s22  ;;  %v565_v37 = vmul.f32 %v2426_v28, %v2414_v25  ;;  %v618_v38 = vsel %vm131_vm0, %v615_v20, %v617_v23  ;;  %v753_v20 = vrot.slane %v703_v5, 2 }
  0x36   :  { %v625_v47 = vrot.slane %v565_v37, 1  ;;  %v705_v37 = vmul.f32 %v2553_v56, %v2363_v10 }
  0x38   :  { %636 = vrot.lane.b32.xlu1 %v598_v50, %s2305_s22  ;;  %634 = vrot.lane.b32.xlu0 %v596_v51, %s2305_s22  ;;  %v569_v50 = vmul.f32 %v2426_v28, %v2541_v46  ;;  %v567_v51 = vmul.f32 %v2426_v28, %v2440_v32  ;;  %v628_v57 = vsel %vm131_vm0, %v625_v47, %v627_v48  ;;  %v757_v43 = vrot.slane %v705_v37, 2 }
  0x39   :  { %v626_v61 = vsel %vm131_vm0, %v624_v55, %v625_v47  ;;  %v700_v28 = vmul.f32 %v2553_v56, %v2347_v4  ;;  %v708_v47 = vmul.f32 %v2553_v56, %v2377_v14 }
  0x3b   :  { %v762_v55 = vrot.slane %v708_v47, 2 }
  0x3c   :  { %640 = vrot.lane.b32.xlu1 %v603_v59, %s2305_s22  ;;  %638 = vrot.lane.b32.xlu0 %v601_v60, %s2305_s22  ;;  %v632_v59 = vrot.slane %v569_v50, 1  ;;  %v629_v60 = vrot.slane %v567_v51, 1  ;;  %v712_v50 = vmul.f32 %v2553_v56, %v2386_v17  ;;  %v713_v51 = vmul.f32 %v2553_v56, %v2496_v63 }
  0x3e   :  { %v633_v6 = vsel %vm131_vm0, %v630_v58, %v632_v59  ;;  %v631_v7 = vsel %vm131_vm0, %v629_v60, %v630_v58  ;;  %v715_v58 = vmul.f32 %v2553_v56, %v2400_v21  ;;  %v716_v59 = vmul.f32 %v2553_v56, %v2511_v16 }
  0x3f   :  { %v768_v60 = vrot.slane %v712_v50, 2 }
  0x40   :  { %644 = vrot.lane.b32.xlu1 %v608_v8, %s2305_s22  ;;  %642 = vrot.lane.b32.xlu0 %v606_v11, %s2305_s22  ;;  %v704_v8 = vmul.f32 %v2553_v56, %v2451_v36  ;;  %v748_v11 = vrot.slane %v700_v28, 2  ;;  %v714_v28 = vmul.f32 %v2553_v56, %v2405_v22 }
  0x42   :  { %v755_v23 = vrot.slane %v704_v8, 2  ;;  %v751_v30 = vsel %vm253_vm1, %v748_v11, %v750_v12  ;;  %v749_v33 = vsel %vm253_vm1, %v747_v15, %v748_v11  ;;  %v772_v11 = vrot.slane %v714_v28, 2 }
  0x43   :  { %v718_v15 = vmul.f32 %v2553_v56, %v2414_v25 }
  0x44   :  { %648 = vrot.lane.b32.xlu1 %v613_v19, %s2305_s22  ;;  %646 = vrot.lane.b32.xlu0 %v611_v29, %s2305_s22  ;;  %v702_v19 = vmul.f32 %v2553_v56, %v2332_v0  ;;  %v707_v29 = vmul.f32 %v2553_v56, %v2466_v45 }
  0x46   :  { %v752_v34 = vrot.slane %v702_v19, 2  ;;  %v760_v40 = vrot.slane %v707_v29, 2  ;;  %v719_v19 = vmul.f32 %v2553_v56, %v2526_v35 }
  0x48   :  { %652 = vrot.lane.b32.xlu1 %v618_v38, %s2305_s22  ;;  %650 = vrot.lane.b32.xlu0 %v616_v41, %s2305_s22  ;;  %v756_v38 = vsel %vm253_vm1, %v753_v20, %v755_v23  ;;  %v709_v41 = vmul.f32 %v2553_v56, %v2372_v13  ;;  %v754_v42 = vsel %vm253_vm1, %v752_v34, %v753_v20  ;;  %v778_v34 = vrot.slane %v718_v15, 2 }
  0x49   :  { %v761_v48 = vsel %vm253_vm1, %v758_v39, %v760_v40  ;;  %v717_v20 = vmul.f32 %v2553_v56, %v2419_v26  ;;  %v780_v37 = vrot.slane %v719_v19, 2  ;;  %v783_v40 = vrot.slane %v721_v24, 2 }
  0x4a   :  { %v763_v49 = vrot.slane %v709_v41, 2 }
  0x4c   :  { %656 = vrot.lane.b32.xlu1 %v623_v52, %s2305_s22  ;;  %654 = vrot.lane.b32.xlu0 %v621_v53, %s2305_s22  ;;  %v759_v52 = vsel %vm253_vm1, %v757_v43, %v758_v39  ;;  %v765_v53 = vrot.slane %v710_v44, 2  ;;  %v764_v2 = vsel %vm253_vm1, %v762_v55, %v763_v49  ;;  %v2635_v39 = vstv %s2210_s9 }
  0x4d   :  { %v853_v43 = vmul.f32 %v2635_v39, %v2347_v4  ;;  %v781_v44 = vsel %vm253_vm1, %v778_v34, %v780_v37  ;;  %v858_v28 = vmul.f32 %v2635_v39, %v2363_v10 }
  0x4e   :  { %v766_v62 = vsel %vm253_vm1, %v763_v49, %v765_v53 }
  0x50   :  { %660 = vrot.lane.b32.xlu1 %v628_v57, %s2305_s22  ;;  %658 = vrot.lane.b32.xlu0 %v626_v61, %s2305_s22  ;;  %v711_v57 = vmul.f32 %v2553_v56, %v2391_v18  ;;  %v770_v61 = vrot.slane %v713_v51, 2  ;;  %v901_v51 = vrot.slane %v853_v43, 3  ;;  %v869_v43 = vmul.f32 %v2635_v39, %v2511_v16 }
  0x52   :  { %v767_v5 = vrot.slane %v711_v57, 2  ;;  %v771_v8 = vsel %vm253_vm1, %v768_v60, %v770_v61  ;;  %v857_v57 = vmul.f32 %v2635_v39, %v2451_v36  ;;  %v860_v61 = vmul.f32 %v2635_v39, %v2466_v45 }
  0x54   :  { %664 = vrot.lane.b32.xlu1 %v633_v6, %s2305_s22  ;;  %662 = vrot.lane.b32.xlu0 %v631_v7, %s2305_s22  ;;  %v773_v6 = vrot.slane %v715_v58, 2  ;;  %v775_v7 = vrot.slane %v716_v59, 2  ;;  %v769_v12 = vsel %vm253_vm1, %v767_v5, %v768_v60  ;;  %v855_v58 = vmul.f32 %v2635_v39, %v2332_v0 }
  0x55   :  { %v859_v60 = vmul.f32 %v2635_v39, %v2358_v9  ;;  %v908_v5 = vrot.slane %v857_v57, 3 }
  0x56   :  { %v776_v23 = vsel %vm253_vm1, %v773_v6, %v775_v7  ;;  %v774_v29 = vsel %vm253_vm1, %v772_v11, %v773_v6  ;;  %v905_v6 = vrot.slane %v855_v58, 3  ;;  %v910_v11 = vrot.slane %v858_v28, 3 }
  0x57   :  { %v911_v7 = vrot.slane %v859_v60, 3 }
  0x58   :  { %789 = vrot.lane.b32.xlu1 %v751_v30, %s2305_s22  ;;  %787 = vrot.lane.b32.xlu0 %v749_v33, %s2305_s22  ;;  %v722_v30 = vmul.f32 %v2553_v56, %v2541_v46  ;;  %v720_v33 = vmul.f32 %v2553_v56, %v2440_v32  ;;  %v854_v56 = vmul.f32 %v2635_v39, %v2424_v27 }
  0x5a   :  { %v785_v41 = vrot.slane %v722_v30, 2  ;;  %v903_v53 = vrot.slane %v854_v56, 3 }
  0x5c   :  { %793 = vrot.lane.b32.xlu1 %v756_v38, %s2305_s22  ;;  %791 = vrot.lane.b32.xlu0 %v754_v42, %s2305_s22  ;;  %v777_v38 = vrot.slane %v717_v20, 2  ;;  %v782_v42 = vrot.slane %v720_v33, 2  ;;  %v786_v49 = vsel %vm253_vm1, %v783_v40, %v785_v41  ;;  %v863_v20 = vmul.f32 %v2635_v39, %v2481_v54 }
  0x5d   :  { %v865_v33 = vmul.f32 %v2635_v39, %v2386_v17  ;;  %v868_v41 = vmul.f32 %v2635_v39, %v2400_v21 }
  0x5e   :  { %v779_v47 = vsel %vm253_vm1, %v777_v38, %v778_v34  ;;  %v784_v50 = vsel %vm253_vm1, %v782_v42, %v783_v40  ;;  %v918_v34 = vrot.slane %v863_v20, 3  ;;  %v866_v38 = vmul.f32 %v2635_v39, %v2496_v63 }
  0x5f   :  { %v864_v40 = vmul.f32 %v2635_v39, %v2391_v18  ;;  %v921_v42 = vrot.slane %v865_v33, 3  ;;  %v1004_v33 = vstv %s2199_s10  ;;  %s3444_s10 = sld [smem:[#allocation2 + $0x3]] }
  0x60   :  { %797 = vrot.lane.b32.xlu1 %v761_v48, %s2305_s22  ;;  %795 = vrot.lane.b32.xlu0 %v759_v52, %s2305_s22  ;;  %v852_v48 = vmul.f32 %v2635_v39, %v2337_v1  ;;  %v856_v52 = vmul.f32 %v2635_v39, %v2342_v3 }
  0x62   :  { %v900_v55 = vrot.slane %v852_v48, 3  ;;  %v906_v59 = vrot.slane %v856_v52, 3  ;;  %v923_v48 = vrot.slane %v866_v38, 3  ;;  %v1006_v38 = vmul.f32 %v1004_v33, %v2347_v4 }
  0x64   :  { %801 = vrot.lane.b32.xlu1 %v766_v62, %s2305_s22  ;;  %799 = vrot.lane.b32.xlu0 %v764_v2, %s2305_s22  ;;  %v904_v62 = vsel %vm375_vm2, %v901_v51, %v903_v53  ;;  %v902_v2 = vsel %vm375_vm2, %v900_v55, %v901_v51  ;;  %v909_v15 = vsel %vm375_vm2, %v906_v59, %v908_v5  ;;  %v928_v51 = vrot.slane %v869_v43, 3 }
  0x65   :  { %v907_v19 = vsel %vm375_vm2, %v905_v6, %v906_v59  ;;  %v871_v53 = vmul.f32 %v2635_v39, %v2414_v25  ;;  %v872_v55 = vmul.f32 %v2635_v39, %v2526_v35  ;;  %v924_v57 = vsel %vm375_vm2, %v921_v42, %v923_v48 }
  0x66   :  { %v870_v59 = vmul.f32 %v2635_v39, %v2419_v26  ;;  %v874_v5 = vmul.f32 %v2635_v39, %v2435_v31  ;;  %v875_v6 = vmul.f32 %v2635_v39, %v2541_v46  ;;  %v1008_v43 = vmul.f32 %v1004_v33, %v2342_v3 }
  0x67   :  { %v931_v28 = vrot.slane %v871_v53, 3  ;;  %v1010_v48 = vmul.f32 %v1004_v33, %v2358_v9  ;;  %v1011_v53 = vmul.f32 %v1004_v33, %v2377_v14 }
  0x68   :  { %805 = vrot.lane.b32.xlu1 %v771_v8, %s2305_s22  ;;  %803 = vrot.lane.b32.xlu0 %v769_v12, %s2305_s22  ;;  %v913_v8 = vrot.slane %v860_v61, 3  ;;  %v862_v12 = vmul.f32 %v2635_v39, %v2372_v13  ;;  %v938_v20 = vrot.slane %v875_v6, 3 }
  0x6a   :  { %v914_v24 = vsel %vm375_vm2, %v911_v7, %v913_v8  ;;  %v916_v30 = vrot.slane %v862_v12, 3 }
  0x6c   :  { %809 = vrot.lane.b32.xlu1 %v776_v23, %s2305_s22  ;;  %807 = vrot.lane.b32.xlu0 %v774_v29, %s2305_s22  ;;  %v861_v23 = vmul.f32 %v2635_v39, %v2377_v14  ;;  %v912_v29 = vsel %vm375_vm2, %v910_v11, %v911_v7  ;;  %v873_v7 = vmul.f32 %v2635_v39, %v2440_v32 }
  0x6e   :  { %v915_v37 = vrot.slane %v861_v23, 3  ;;  %v935_v23 = vrot.slane %v873_v7, 3  ;;  %v1018_v7 = vmul.f32 %v1004_v33, %v2414_v25 }
  0x70   :  { %813 = vrot.lane.b32.xlu1 %v781_v44, %s2305_s22  ;;  %811 = vrot.lane.b32.xlu0 %v779_v47, %s2305_s22  ;;  %v867_v44 = vmul.f32 %v2635_v39, %v2405_v22  ;;  %v919_v47 = vsel %vm375_vm2, %v916_v30, %v918_v34  ;;  %v917_v56 = vsel %vm375_vm2, %v915_v37, %v916_v30 }
  0x72   :  { %v925_v52 = vrot.slane %v867_v44, 3  ;;  %v1007_v44 = vmul.f32 %v1004_v33, %v2332_v0 }
  0x74   :  { %817 = vrot.lane.b32.xlu1 %v786_v49, %s2305_s22  ;;  %815 = vrot.lane.b32.xlu0 %v784_v50, %s2305_s22  ;;  %v920_v49 = vrot.slane %v864_v40, 3  ;;  %v926_v50 = vrot.slane %v868_v41, 3  ;;  %v1005_v40 = vmul.f32 %v1004_v33, %v2337_v1 }
  0x76   :  { %v922_v58 = vsel %vm375_vm2, %v920_v49, %v921_v42  ;;  %v929_v60 = vsel %vm375_vm2, %v926_v50, %v928_v51  ;;  %v927_v61 = vsel %vm375_vm2, %v925_v52, %v926_v50  ;;  %v1009_v49 = vmul.f32 %v1004_v33, %v2363_v10 }
  0x77   :  { %v1012_v52 = vmul.f32 %v1004_v33, %v2372_v13 }
  0x78   :  { %942 = vrot.lane.b32.xlu1 %v904_v62, %s2305_s22  ;;  %940 = vrot.lane.b32.xlu0 %v902_v2, %s2305_s22  ;;  %v933_v62 = vrot.slane %v872_v55, 3  ;;  %v930_v2 = vrot.slane %v870_v59, 3  ;;  %v1013_v59 = vmul.f32 %v1004_v33, %v2391_v18 }
  0x7a   :  { %v934_v12 = vsel %vm375_vm2, %v931_v28, %v933_v62  ;;  %v1015_v62 = vmul.f32 %v1004_v33, %v2405_v22 }
  0x7c   :  { %946 = vrot.lane.b32.xlu1 %v909_v15, %s2305_s22  ;;  %944 = vrot.lane.b32.xlu0 %v907_v19, %s2305_s22  ;;  %v932_v15 = vsel %vm375_vm2, %v930_v2, %v931_v28  ;;  %v936_v19 = vrot.slane %v874_v5, 3  ;;  %v1016_v28 = vmul.f32 %v1004_v33, %v2400_v21 }
  0x7e   :  { %v939_v39 = vsel %vm375_vm2, %v936_v19, %v938_v20  ;;  %v937_v30 = vsel %vm375_vm2, %v935_v23, %v936_v19 }
  0x80   :  { %950 = vrot.lane.b32.xlu1 %v914_v24, %s2305_s22  ;;  %948 = vrot.lane.b32.xlu0 %v912_v29, %s2305_s22 }
  0x84   :  { %954 = vrot.lane.b32.xlu1 %v919_v47, %s2305_s22  ;;  %952 = vrot.lane.b32.xlu0 %v917_v56, %s2305_s22 }
  0x88   :  { %958 = vrot.lane.b32.xlu1 %v924_v57, %s2305_s22  ;;  %956 = vrot.lane.b32.xlu0 %v922_v58, %s2305_s22  ;;  %v1014_v58 = vmul.f32 %v1004_v33, %v2386_v17 }
  0x8a   :  { %v2717_v8 = vpop.permute.xlu1 %485  ;;  %v2719_v11 = vpop.permute.xlu0 %481 }
  0x8b   :  { %4475 = vst [vmem:[#allocation8_spill] sm:$0xff] %v2719_v11 }
  0x8c   :  { %962 = vrot.lane.b32.xlu1 %v929_v60, %s2305_s22  ;;  %960 = vrot.lane.b32.xlu0 %v927_v61, %s2305_s22 }
  0x8e   :  { %v2725_v24 = vpop.permute.xlu1 %487  ;;  %v2727_v29 = vpop.permute.xlu0 %483 }
  0x8f   :  { %4476 = vst [vmem:[#allocation9_spill] sm:$0xff] %v2725_v24  ;;  %4477 = vst [vmem:[#allocation10_spill] sm:$0xff] %v2727_v29 }
  0x90   :  { %966 = vrot.lane.b32.xlu1 %v934_v12, %s2305_s22  ;;  %964 = vrot.lane.b32.xlu0 %v932_v15, %s2305_s22  ;;  %v1017_v12 = vmul.f32 %v1004_v33, %v2419_v26 }
  0x92   :  { %v2733_v34 = vpop.permute.xlu1 %491  ;;  %v2735_v37 = vpop.permute.xlu0 %489 }
  0x93   :  { %4478 = vst [vmem:[#allocation11_spill] sm:$0xff] %v2733_v34  ;;  %4479 = vst [vmem:[#allocation12_spill] sm:$0xff] %v2735_v37 }
  0x94   :  { %970 = vrot.lane.b32.xlu1 %v939_v39, %s2305_s22  ;;  %968 = vrot.lane.b32.xlu0 %v937_v30, %s2305_s22  ;;  %s2203_s22 = sld [smem:[#allocation2 + $0x6]]  ;;  %v1020_v30 = vmul.f32 %v1004_v33, %v2435_v31 }
  0x96   :  { %v2741_v41 = vpop.permute.xlu1 %495  ;;  %v2743_v42 = vpop.permute.xlu0 %493 }
  0x97   :  { %4480 = vst [vmem:[#allocation13_spill] sm:$0xff] %v2741_v41  ;;  %4481 = vst [vmem:[#allocation14_spill] sm:$0xff] %v2743_v42 }
  0x98   :  { %1039 = vrot.lane.b32.xlu1 %v1006_v38, %s2306_s11  ;;  %1037 = vrot.lane.b32.xlu0 %v1005_v40, %s2306_s11  ;;  %v1019_v38 = vmul.f32 %v1004_v33, %v2440_v32 }
  0x9a   :  { %v2749_v47 = vpop.permute.xlu1 %499  ;;  %v2751_v56 = vpop.permute.xlu0 %497  ;;  %v2785_v6 = vstv %s2203_s22  ;;  %s3617_s22 = sld [smem:[#allocation2 + $0x7]] }
  0x9b   :  { %4482 = vst [vmem:[#allocation15_spill] sm:$0xff] %v2749_v47  ;;  %4483 = vst [vmem:[#allocation16_spill] sm:$0xff] %v2751_v56  ;;  %v1103_v15 = vmul.f32 %v2785_v6, %v2347_v4  ;;  %v1104_v19 = vmul.f32 %v2785_v6, %v2424_v27  ;;  %v1102_v20 = vmul.f32 %v2785_v6, %v2337_v1 }
  0x9c   :  { %1043 = vrot.lane.b32.xlu1 %v1008_v43, %s2306_s11  ;;  %1041 = vrot.lane.b32.xlu0 %v1007_v44, %s2306_s11  ;;  %v1106_v40 = vmul.f32 %v2785_v6, %v2342_v3  ;;  %v1107_v43 = vmul.f32 %v2785_v6, %v2451_v36 }
  0x9d   :  { %v1151_v44 = vrot.slane %v1103_v15, 1 }
  0x9e   :  { %v2757_v50 = vpop.permute.xlu1 %503  ;;  %v2759_v51 = vpop.permute.xlu0 %501  ;;  %v1156_v33 = vrot.slane %v1106_v40, 1 }
  0x9f   :  { %4484 = vst [vmem:[#allocation17_spill] sm:$0xff] %v2757_v50  ;;  %4485 = vst [vmem:[#allocation18_spill] sm:$0xff] %v2759_v51 }
  0xa0   :  { %1047 = vrot.lane.b32.xlu1 %v1010_v48, %s2306_s11  ;;  %1045 = vrot.lane.b32.xlu0 %v1009_v49, %s2306_s11  ;;  %v1153_v48 = vrot.slane %v1104_v19, 1  ;;  %v1150_v49 = vrot.slane %v1102_v20, 1  ;;  %v1108_v19 = vmul.f32 %v2785_v6, %v2363_v10 }
  0xa2   :  { %v2765_v55 = vpop.permute.xlu1 %507  ;;  %v2767_v57 = vpop.permute.xlu0 %505 }
  0xa3   :  { %4486 = vst [vmem:[#allocation19_spill] sm:$0xff] %v2765_v55  ;;  %4487 = vst [vmem:[#allocation20_spill] sm:$0xff] %v2767_v57 }
  0xa4   :  { %1051 = vrot.lane.b32.xlu1 %v1012_v52, %s2306_s11  ;;  %1049 = vrot.lane.b32.xlu0 %v1011_v53, %s2306_s11  ;;  %v1105_v52 = vmul.f32 %v2785_v6, %v2332_v0 }
  0xa6   :  { %v2773_v60 = vpop.permute.xlu1 %511  ;;  %v2775_v61 = vpop.permute.xlu0 %509  ;;  %v1155_v15 = vrot.slane %v1105_v52, 1  ;;  %v1160_v52 = vrot.slane %v1108_v19, 1 }
  0xa7   :  { %4488 = vst [vmem:[#allocation21_spill] sm:$0xff] %v2773_v60  ;;  %4489 = vst [vmem:[#allocation22_spill] sm:$0xff] %v2775_v61 }
  0xa8   :  { %1055 = vrot.lane.b32.xlu1 %v1014_v58, %s2306_s11  ;;  %1053 = vrot.lane.b32.xlu0 %v1013_v59, %s2306_s11  ;;  %v1158_v59 = vrot.slane %v1107_v43, 1 }
  0xaa   :  { %v2781_v2 = vpop.permute.xlu1 %636  ;;  %v2783_v5 = vpop.permute.xlu0 %634  ;;  %v1159_v40 = vsel %vm131_vm0, %v1156_v33, %v1158_v59 }
  0xab   :  { %4490 = vst [vmem:[#allocation23_spill] sm:$0xff] %v2781_v2  ;;  %4491 = vst [vmem:[#allocation24_spill] sm:$0xff] %v2783_v5 }
  0xac   :  { %1059 = vrot.lane.b32.xlu1 %v1016_v28, %s2306_s11  ;;  %1057 = vrot.lane.b32.xlu0 %v1015_v62, %s2306_s11  ;;  %v1109_v28 = vmul.f32 %v2785_v6, %v2358_v9  ;;  %v1110_v62 = vmul.f32 %v2785_v6, %v2466_v45 }
  0xae   :  { %v2797_v23 = vpop.permute.xlu1 %640  ;;  %v2799_v39 = vpop.permute.xlu0 %638  ;;  %v1161_v43 = vrot.slane %v1109_v28, 1  ;;  %v1115_v28 = vmul.f32 %v2785_v6, %v2386_v17 }
  0xaf   :  { %4492 = vst [vmem:[#allocation25_spill] sm:$0xff] %v2797_v23  ;;  %4493 = vst [vmem:[#allocation26_spill] sm:$0xff] %v2799_v39  ;;  %v3095_v23 = vld [vmem:[%s4463_s1 + $0x28] sm:$0x7] }
  0xb0   :  { %1063 = vrot.lane.b32.xlu1 %v1018_v7, %s2306_s11  ;;  %1061 = vrot.lane.b32.xlu0 %v1017_v12, %s2306_s11  ;;  %v1154_v7 = vsel %vm131_vm0, %v1151_v44, %v1153_v48  ;;  %v1152_v12 = vsel %vm131_vm0, %v1150_v49, %v1151_v44  ;;  %v1113_v44 = vmul.f32 %v2785_v6, %v2481_v54  ;;  %v1163_v49 = vrot.slane %v1110_v62, 1 }
  0xb1   :  { %v1157_v48 = vsel %vm131_vm0, %v1155_v15, %v1156_v33  ;;  %v1116_v33 = vmul.f32 %v2785_v6, %v2496_v63  ;;  %v1114_v62 = vmul.f32 %v2785_v6, %v2391_v18  ;;  %v1162_v15 = vsel %vm131_vm0, %v1160_v52, %v1161_v43 }
  0xb2   :  { %v2811_v53 = vpop.permute.xlu1 %644  ;;  %v2813_v58 = vpop.permute.xlu0 %642  ;;  %v1168_v59 = vrot.slane %v1113_v44, 1 }
  0xb3   :  { %4494 = vst [vmem:[#allocation27_spill] sm:$0xff] %v2811_v53  ;;  %4495 = vst [vmem:[#allocation28_spill] sm:$0xff] %v2813_v58 }
  0xb4   :  { %1067 = vrot.lane.b32.xlu1 %v1020_v30, %s2306_s11  ;;  %1065 = vrot.lane.b32.xlu0 %v1019_v38, %s2306_s11  ;;  %v1112_v38 = vmul.f32 %v2785_v6, %v2372_v13 }
  0xb6   :  { %v2825_v20 = vpop.permute.xlu1 %648  ;;  %v2827_v30 = vpop.permute.xlu0 %646 }
  0xb7   :  { %4496 = vst [vmem:[#allocation29_spill] sm:$0xff] %v2825_v20  ;;  %4497 = vst [vmem:[#allocation30_spill] sm:$0xff] %v2827_v30  ;;  %v1111_v30 = vmul.f32 %v2785_v6, %v2377_v14 }
  0xb8   :  { %1192 = vrot.lane.b32.xlu1 %v1154_v7, %s2306_s11  ;;  %1190 = vrot.lane.b32.xlu0 %v1152_v12, %s2306_s11  ;;  %v1166_v7 = vrot.slane %v1112_v38, 1  ;;  %v1164_v12 = vsel %vm131_vm0, %v1161_v43, %v1163_v49  ;;  %v1118_v43 = vmul.f32 %v2785_v6, %v2400_v21  ;;  %v1117_v49 = vmul.f32 %v2785_v6, %v2405_v22 }
  0xb9   :  { %v1165_v19 = vrot.slane %v1111_v30, 1  ;;  %v1119_v30 = vmul.f32 %v2785_v6, %v2511_v16 }
  0xba   :  { %v2839_v20 = vpop.permute.xlu1 %652  ;;  %v2841_v58 = vpop.permute.xlu0 %650  ;;  %v1169_v44 = vsel %vm131_vm0, %v1166_v7, %v1168_v59  ;;  %v1121_v59 = vmul.f32 %v2785_v6, %v2414_v25  ;;  %v1176_v22 = vrot.slane %v1118_v43, 1 }
  0xbb   :  { %4498 = vst [vmem:[#allocation31_spill] sm:$0xff] %v2839_v20  ;;  %4499 = vst [vmem:[#allocation32_spill] sm:$0xff] %v2841_v58  ;;  %v1173_v58 = vrot.slane %v1116_v33, 1  ;;  %v1170_v20 = vrot.slane %v1114_v62, 1  ;;  %v1167_v53 = vsel %vm131_vm0, %v1165_v19, %v1166_v7  ;;  %v1178_v33 = vrot.slane %v1119_v30, 1 }
  0xbc   :  { %1196 = vrot.lane.b32.xlu1 %v1159_v40, %s2306_s11  ;;  %1194 = vrot.lane.b32.xlu0 %v1157_v48, %s2306_s11  ;;  %v1171_v48 = vrot.slane %v1115_v28, 1  ;;  %v1122_v28 = vmul.f32 %v2785_v6, %v2526_v35  ;;  %v1175_v62 = vrot.slane %v1117_v49, 1  ;;  %v1123_v49 = vmul.f32 %v2785_v6, %v2440_v32 }
  0xbe   :  { %v2853_v38 = vpop.permute.xlu1 %656  ;;  %v2855_v40 = vpop.permute.xlu0 %654  ;;  %v1174_v21 = vsel %vm131_vm0, %v1171_v48, %v1173_v58  ;;  %v1172_v7 = vsel %vm131_vm0, %v1170_v20, %v1171_v48  ;;  %v1183_v58 = vrot.slane %v1122_v28, 1  ;;  %v1124_v20 = vmul.f32 %v2785_v6, %v2435_v31 }
  0xbf   :  { %4500 = vst [vmem:[#allocation33_spill] sm:$0xff] %v2853_v38  ;;  %4501 = vst [vmem:[#allocation34_spill] sm:$0xff] %v2855_v40  ;;  %v1125_v48 = vmul.f32 %v2785_v6, %v2541_v46  ;;  %v1177_v43 = vsel %vm131_vm0, %v1175_v62, %v1176_v22 }
  0xc0   :  { %1200 = vrot.lane.b32.xlu1 %v1164_v12, %s2306_s11  ;;  %1198 = vrot.lane.b32.xlu0 %v1162_v15, %s2306_s11  ;;  %v1120_v15 = vmul.f32 %v2785_v6, %v2419_v26  ;;  %v1179_v26 = vsel %vm131_vm0, %v1176_v22, %v1178_v33  ;;  %v1185_v6 = vrot.slane %v1123_v49, 1 }
  0xc1   :  { %v1188_v28 = vrot.slane %v1125_v48, 1  ;;  %v2925_v48 = vstv %s2205_s14 }
  0xc2   :  { %v2867_v52 = vpop.permute.xlu1 %660  ;;  %v2869_v12 = vpop.permute.xlu0 %658  ;;  %v1180_v30 = vrot.slane %v1120_v15, 1 }
  0xc3   :  { %4502 = vst [vmem:[#allocation35_spill] sm:$0xff] %v2867_v52  ;;  %4503 = vst [vmem:[#allocation36_spill] sm:$0xff] %v2869_v12 }
  0xc4   :  { %1204 = vrot.lane.b32.xlu1 %v1169_v44, %s2306_s11  ;;  %1202 = vrot.lane.b32.xlu0 %v1167_v53, %s2306_s11  ;;  %v2885_v44 = vstv %s2207_s12  ;;  %v1181_v53 = vrot.slane %v1121_v59, 1  ;;  %v2903_v59 = vstv %s2201_s13  ;;  %s3827_s12 = sld [smem:[#allocation2 + $0xb]] }
  0xc5   :  { %v1256_v22 = vmul.f32 %v2885_v44, %v2347_v4  ;;  %v1257_v33 = vmul.f32 %v2885_v44, %v2424_v27  ;;  %v1255_v62 = vmul.f32 %v2885_v44, %v2337_v1  ;;  %v1261_v12 = vmul.f32 %v2885_v44, %v2363_v10 }
  0xc6   :  { %v2881_v19 = vpop.permute.xlu1 %664  ;;  %v2883_v25 = vpop.permute.xlu0 %662  ;;  %v1184_v31 = vsel %vm131_vm0, %v1181_v53, %v1183_v58  ;;  %v1182_v32 = vsel %vm131_vm0, %v1180_v30, %v1181_v53  ;;  %v86_v58 = vmul.f32 %v2903_v59, %v2332_v0  ;;  %v1260_v30 = vmul.f32 %v2885_v44, %v2451_v36 }
  0xc7   :  { %4504 = vst [vmem:[#allocation37_spill] sm:$0xff] %v2881_v19  ;;  %4505 = vst [vmem:[#allocation38_spill] sm:$0xff] %v2883_v25  ;;  %v1304_v53 = vrot.slane %v1256_v22, 2  ;;  %v1267_v52 = vmul.f32 %v2885_v44, %v2391_v18 }
  0xc8   :  { %1208 = vrot.lane.b32.xlu1 %v1174_v21, %s2306_s11  ;;  %1206 = vrot.lane.b32.xlu0 %v1172_v7, %s2306_s11  ;;  %v1186_v7 = vrot.slane %v1124_v20, 1  ;;  %v2923_v20 = vmul.f32 %v2903_v59, %v2342_v3 }
  0xca   :  { %v2897_v25 = vpop.permute.xlu1 %789  ;;  %v2899_v21 = vpop.permute.xlu0 %787  ;;  %v1189_v27 = vsel %vm131_vm0, %v1186_v7, %v1188_v28  ;;  %v1187_v49 = vsel %vm131_vm0, %v1185_v6, %v1186_v7  ;;  %v2943_v28 = vmul.f32 %v2925_v48, %v2342_v3  ;;  %v2951_v7 = vstv %s2901_s15 }
  0xcb   :  { %4506 = vst [vmem:[#allocation39_spill] sm:$0xff] %v2897_v25  ;;  %4507 = vst [vmem:[#allocation40_spill] sm:$0xff] %v2899_v21  ;;  %v1258_v21 = vmul.f32 %v2885_v44, %v2332_v0  ;;  %v137_v25 = vrot.slane %v86_v58, 1  ;;  %v2979_v10 = vmul.f32 %v2951_v7, %v2342_v3 }
  0xcc   :  { %1212 = vrot.lane.b32.xlu1 %v1179_v26, %s2306_s11  ;;  %1210 = vrot.lane.b32.xlu0 %v1177_v43, %s2306_s11  ;;  %v1259_v43 = vmul.f32 %v2885_v44, %v2342_v3 }
  0xcd   :  { %v1308_v19 = vrot.slane %v1258_v21, 2 }
  0xce   :  { %v2915_v15 = vpop.permute.xlu1 %793  ;;  %v2917_v26 = vpop.permute.xlu0 %791  ;;  %v1309_v6 = vrot.slane %v1259_v43, 2  ;;  %v2966_v43 = vmul.f32 %v2951_v7, %v2332_v0 }
  0xcf   :  { %4508 = vst [vmem:[#allocation41_spill] sm:$0xff] %v2915_v15  ;;  %4509 = vst [vmem:[#allocation42_spill] sm:$0xff] %v2917_v26  ;;  %v1306_v26 = vrot.slane %v1257_v33, 2  ;;  %v1303_v15 = vrot.slane %v1255_v62, 2  ;;  %v1311_v33 = vrot.slane %v1260_v30, 2  ;;  %v1262_v62 = vmul.f32 %v2885_v44, %v2358_v9 }
  0xd0   :  { %1216 = vrot.lane.b32.xlu1 %v1184_v31, %s2306_s11  ;;  %1214 = vrot.lane.b32.xlu0 %v1182_v32, %s2306_s11  ;;  %v208_v31 = vmul.f32 %v2925_v48, %v2332_v0  ;;  %v83_v9 = vmul.f32 %v2903_v59, %v2337_v1  ;;  %v2986_v0 = vmul.f32 %v2903_v59, %v2347_v4 }
  0xd1   :  { %v1305_v58 = vsel %vm253_vm1, %v1303_v15, %v1304_v53  ;;  %v4514_v15 = vrot.slane %v2923_v20, 1  ;;  %v1312_v1 = vsel %vm253_vm1, %v1309_v6, %v1311_v33  ;;  %v1310_v3 = vsel %vm253_vm1, %v1308_v19, %v1309_v6 }
  0xd2   :  { %v2945_v22 = vpop.permute.xlu1 %797  ;;  %v2947_v32 = vpop.permute.xlu0 %795  ;;  %v1264_v4 = vmul.f32 %v2885_v44, %v2377_v14  ;;  %v381_v33 = vrot.slane %v2966_v43, 3  ;;  %v3025_v43 = vld [vmem:[%s4463_s1 + $0x8] sm:$0xff]  ;;  %v1268_v6 = vmul.f32 %v2885_v44, %v2386_v17 }
  0xd3   :  { %4510 = vst [vmem:[#allocation43_spill] sm:$0xff] %v2945_v22  ;;  %4511 = vst [vmem:[#allocation44_spill] sm:$0xff] %v2947_v32  ;;  %v1263_v22 = vmul.f32 %v2885_v44, %v2466_v45  ;;  %v1307_v32 = vsel %vm253_vm1, %v1304_v53, %v1306_v26  ;;  %v139_v21 = vsel %vm131_vm0, %v137_v25, %v4514_v15  ;;  %v2982_v26 = vstv %s2927_s16 }
  0xd4   :  { %1220 = vrot.lane.b32.xlu1 %v1189_v27, %s2306_s11  ;;  %1218 = vrot.lane.b32.xlu0 %v1187_v49, %s2306_s11  ;;  %v259_v27 = vrot.slane %v208_v31, 2  ;;  %v1314_v53 = vrot.slane %v1262_v62, 2  ;;  %v1265_v25 = vmul.f32 %v2885_v44, %v2372_v13  ;;  %v1313_v15 = vrot.slane %v1261_v12, 2  ;;  %v3018_v62 = vld [vmem:[%s4463_s1] sm:$0xff] }
  0xd5   :  { %v1316_v31 = vrot.slane %v1263_v22, 2  ;;  %v1266_v49 = vmul.f32 %v2885_v44, %v2481_v54  ;;  %v3005_v22 = vld [vmem:[%s4463_s1 + $0x18] sm:$0xff]  ;;  %v132_v12 = vrot.slane %v83_v9, 1  ;;  %v3029_v9 = vmul.f32 %v3025_v43, %v2925_v48 }
  0xd6   :  { %v2970_v30 = vpop.permute.xlu1 %801  ;;  %v2972_v45 = vpop.permute.xlu0 %799  ;;  %v68_v13 = vmul.f32 %v3005_v22, %v2982_v26  ;;  %v1319_v14 = vrot.slane %v1265_v25, 2  ;;  %v66_v17 = vmul.f32 %v3018_v62, %v2982_v26 }
  0xd7   :  { %4512 = vst [vmem:[#allocation45_spill] sm:$0xff] %v2970_v30  ;;  %4513 = vst [vmem:[#allocation46_spill] sm:$0xff] %v2972_v45  ;;  %v1321_v45 = vrot.slane %v1266_v49, 2  ;;  %v1318_v30 = vrot.slane %v1264_v4, 2  ;;  %v4520_v49 = vrot.slane %v2986_v0, 1 }
  0xd8   :  { %1345 = vrot.lane.b32.xlu1 %v1307_v32, %s2306_s11  ;;  %1343 = vrot.lane.b32.xlu0 %v1305_v58, %s2306_s11  ;;  %v4515_v32 = vrot.slane %v2943_v28, 2  ;;  %v190_v40 = vadd.f32 %v139_v21, %v68_v13  ;;  %v3066_v13 = vld [vmem:[%s4463_s1 + $0x80] sm:$0xff] }
  0xda   :  { %v261_v58 = vsel %vm253_vm1, %v259_v27, %v4515_v32  ;;  %v3009_v19 = vpop.permute.xlu1 %805  ;;  %v3011_v54 = vpop.permute.xlu0 %803  ;;  %v205_v27 = vmul.f32 %v3018_v62, %v2925_v48  ;;  %v1317_v32 = vsel %vm253_vm1, %v1314_v53, %v1316_v31  ;;  %v3045_v31 = vmul.f32 %v3025_v43, %v2951_v7 }
  0xdb   :  { %4516 = vst [vmem:[#allocation47_spill] sm:$0xff] %v3009_v19  ;;  %4517 = vst [vmem:[#allocation48_spill] sm:$0xff] %v3011_v54  ;;  %v1269_v54 = vmul.f32 %v2885_v44, %v2496_v63  ;;  %v1315_v19 = vsel %vm253_vm1, %v1313_v15, %v1314_v53  ;;  %v134_v53 = vsel %vm131_vm0, %v132_v12, %v4520_v49  ;;  %v1324_v15 = vrot.slane %v1268_v6, 2 }
  0xdc   :  { %1349 = vrot.lane.b32.xlu1 %v1312_v1, %s2306_s11  ;;  %1347 = vrot.lane.b32.xlu0 %v1310_v3, %s2306_s11  ;;  %v327_v1 = vmul.f32 %v3018_v62, %v2951_v7  ;;  %v254_v18 = vrot.slane %v205_v27, 2  ;;  %v88_v3 = vmul.f32 %v2903_v59, %v2451_v36  ;;  %v1271_v12 = vmul.f32 %v3066_v13, %v2885_v44 }
  0xdd   :  { %v1326_v4 = vrot.slane %v1269_v54, 2  ;;  %v1272_v27 = vmul.f32 %v2885_v44, %v2511_v16  ;;  %v1322_v36 = vsel %vm253_vm1, %v1319_v14, %v1321_v45  ;;  %v1320_v49 = vsel %vm253_vm1, %v1318_v30, %v1319_v14 }
  0xde   :  { %v3049_v25 = vpop.permute.xlu1 %809  ;;  %v3051_v63 = vpop.permute.xlu0 %807  ;;  %v4521_v6 = vrot.slane %v2979_v10, 3  ;;  %v4465_v16 = vrot.slane %v3045_v31, 3  ;;  %v4524_v14 = vrot.slane %v3029_v9, 2  ;;  %v140_v39 = vrot.slane %v88_v3, 1 }
  0xdf   :  { %4518 = vst [vmem:[#allocation49_spill] sm:$0xff] %v3049_v25  ;;  %4519 = vst [vmem:[#allocation50_spill] sm:$0xff] %v3051_v63  ;;  %v376_v63 = vrot.slane %v327_v1, 3  ;;  %v188_v25 = vadd.f32 %v134_v53, %v66_v17  ;;  %v1327_v1 = vsel %vm253_vm1, %v1324_v15, %v1326_v4  ;;  %v3105_v17 = vld [vmem:[%s4463_s1 + $0x98] sm:$0xff]  ;;  %v3115_v4 = vld [vmem:[%s4463_s1 + $0x90] sm:$0xff] }
  0xe0   :  { %1353 = vrot.lane.b32.xlu1 %v1317_v32, %s2306_s11  ;;  %1351 = vrot.lane.b32.xlu0 %v1315_v19, %s2306_s11  ;;  %v1323_v32 = vrot.slane %v1267_v52, 2  ;;  %v3077_v19 = vld [vmem:[%s4463_s1 + $0x78] sm:$0xff]  ;;  %v383_v21 = vsel %vm375_vm2, %v381_v33, %v4521_v6  ;;  %v312_v52 = vadd.f32 %v261_v58, %v190_v40  ;;  %v256_v38 = vsel %vm253_vm1, %v254_v18, %v4524_v14 }
  0xe1   :  { %v1270_v54 = vmul.f32 %v3077_v19, %v2885_v44  ;;  %v210_v33 = vmul.f32 %v3095_v23, %v2925_v48  ;;  %v1329_v40 = vrot.slane %v1271_v12, 2  ;;  %v1331_v58 = vrot.slane %v1272_v27, 2  ;;  %4525 = vst [vmem:[#allocation53_spill] sm:$0xff] %v3115_v4 }
  0xe2   :  { %v3085_v45 = vpop.permute.xlu1 %813  ;;  %v3087_v30 = vpop.permute.xlu0 %811  ;;  %v1274_v53 = vmul.f32 %v3105_v17, %v2885_v44  ;;  %v1325_v18 = vsel %vm253_vm1, %v1323_v32, %v1324_v15  ;;  %v1273_v12 = vmul.f32 %v3115_v4, %v2885_v44  ;;  %v378_v27 = vsel %vm375_vm2, %v376_v63, %v4465_v16 }
  0xe3   :  { %4522 = vst [vmem:[#allocation51_spill] sm:$0xff] %v3085_v45  ;;  %4523 = vst [vmem:[#allocation52_spill] sm:$0xff] %v3087_v30  ;;  %v1328_v3 = vrot.slane %v1270_v54, 2  ;;  %v332_v15 = vmul.f32 %v3095_v23, %v2951_v7  ;;  %v4528_v14 = vrot.slane %v2923_v20, 1  ;;  %v3146_v30 = vstv %s3059_s23 }
  0xe4   :  { %1357 = vrot.lane.b32.xlu1 %v1322_v36, %s2306_s11  ;;  %1355 = vrot.lane.b32.xlu0 %v1320_v49, %s2306_s11  ;;  %v1275_v36 = vmul.f32 %v2885_v44, %v2526_v35  ;;  %v310_v49 = vadd.f32 %v256_v38, %v188_v25  ;;  %v3127_v35 = vld [vmem:[%s4463_s1 + $0x20] sm:$0xff]  ;;  %v262_v38 = vrot.slane %v210_v33, 2  ;;  %v3141_v25 = vld [vmem:[%s4463_s1 + $0x10] sm:$0x7]  ;;  %v1334_v20 = vrot.slane %v1274_v53, 2 }
  0xe5   :  { %v69_v32 = vmul.f32 %v3127_v35, %v2982_v26  ;;  %v141_v63 = vsel %vm131_vm0, %v4528_v14, %v140_v39  ;;  %4529 = vst [vmem:[#allocation56_spill] sm:$0xff] %v3141_v25  ;;  %v85_v16 = vmul.f32 %v3141_v25, %v2903_v59  ;;  %v3154_v39 = vld [vmem:[%s4463_s1 + $0xb0] sm:$0xff]  ;;  %v1278_v14 = vmul.f32 %v2885_v44, %v2541_v46 }
  0xe6   :  { %v3131_v54 = vpop.permute.xlu1 %817  ;;  %v3133_v6 = vpop.permute.xlu0 %815  ;;  %v1277_v33 = vmul.f32 %v3154_v39, %v2885_v44  ;;  %v1336_v45 = vrot.slane %v1275_v36, 2  ;;  %v384_v5 = vrot.slane %v332_v15, 3  ;;  %v207_v61 = vmul.f32 %v3141_v25, %v2925_v48 }
  0xe7   :  { %4526 = vst [vmem:[#allocation54_spill] sm:$0xff] %v3131_v54  ;;  %4527 = vst [vmem:[#allocation55_spill] sm:$0xff] %v3133_v6  ;;  %v1332_v6 = vsel %vm253_vm1, %v1329_v40, %v1331_v58  ;;  %v1330_v54 = vsel %vm253_vm1, %v1328_v3, %v1329_v40  ;;  %v3164_v58 = vld [vmem:[%s4463_s1 + $0xa8] sm:$0xff]  ;;  %v191_v2 = vadd.f32 %v141_v63, %v69_v32  ;;  %v4532_v36 = vrot.slane %v2943_v28, 2 }
  0xe8   :  { %1361 = vrot.lane.b32.xlu1 %v1327_v1, %s2306_s11  ;;  %1359 = vrot.lane.b32.xlu0 %v1325_v18, %s2306_s11  ;;  %v1333_v1 = vrot.slane %v1273_v12, 2  ;;  %v1276_v53 = vmul.f32 %v3164_v58, %v2885_v44  ;;  %v3168_v18 = vadd.f32 %v383_v21, %v312_v52  ;;  %v3176_v3 = vadd.f32 %v378_v27, %v310_v49 }
  0xe9   :  { %v263_v12 = vsel %vm253_vm1, %v4532_v36, %v262_v38  ;;  %v1409_v44 = vmul.f32 %v3025_v43, %v3146_v30  ;;  %v1410_v21 = vmul.f32 %v3141_v25, %v3146_v30  ;;  %v135_v52 = vrot.slane %v85_v16, 1 }
  0xea   :  { %v3172_v46 = vpop.permute.xlu1 %942  ;;  %v3174_v40 = vpop.permute.xlu0 %940  ;;  %v329_v15 = vmul.f32 %v3141_v25, %v2951_v7  ;;  %v1339_v27 = vrot.slane %v1277_v33, 2  ;;  %v1341_v49 = vrot.slane %v1278_v14, 2  ;;  %v1337_v28 = vsel %vm253_vm1, %v1334_v20, %v1336_v45 }
  0xeb   :  { %4530 = vst [vmem:[#allocation57_spill] sm:$0xff] %v3172_v46  ;;  %4531 = vst [vmem:[#allocation58_spill] sm:$0xff] %v3174_v40  ;;  %v1335_v32 = vsel %vm253_vm1, %v1333_v1, %v1334_v20  ;;  %v1338_v63 = vrot.slane %v1276_v53, 2  ;;  %v1408_v38 = vmul.f32 %v3018_v62, %v3146_v30  ;;  %v4533_v36 = vrot.slane %v2979_v10, 3  ;;  %v3209_v20 = vld [vmem:[%s4463_s1 + $0x38] sm:$0xff] }
  0xec   :  { %1365 = vrot.lane.b32.xlu1 %v1332_v6, %s2306_s11  ;;  %1363 = vrot.lane.b32.xlu0 %v1330_v54, %s2306_s11  ;;  %v3198_v40 = vadd.f32 %v263_v12, %v191_v2  ;;  %v257_v6 = vrot.slane %v207_v61, 2  ;;  %v67_v54 = vmul.f32 %v3025_v43, %v2982_v26  ;;  %v3213_v10 = vmul.f32 %v3209_v20, %v2903_v59  ;;  %v3218_v61 = vld [vmem:[%s4463_s1 + $0x40] sm:$0x7] }
  0xed   :  { %v3196_v16 = vsel %vm375_vm2, %v4533_v36, %v384_v5  ;;  %v91_v2 = vmul.f32 %v3218_v61, %v2903_v59  ;;  %v1457_v5 = vrot.slane %v1409_v44, 3  ;;  %v1459_v14 = vrot.slane %v1410_v21, 3 }
  0xee   :  { %v3202_v33 = vpop.permute.xlu1 %946  ;;  %v3204_v45 = vpop.permute.xlu0 %944  ;;  %v4536_v1 = vrot.slane %v2986_v0, 1  ;;  %v1342_v12 = vsel %vm253_vm1, %v1339_v27, %v1341_v49  ;;  %v1412_v36 = vmul.f32 %v3127_v35, %v3146_v30  ;;  %v1413_v44 = vmul.f32 %v3095_v23, %v3146_v30 }
  0xef   :  { %4534 = vst [vmem:[#allocation59_spill] sm:$0xff] %v3202_v33  ;;  %4535 = vst [vmem:[#allocation60_spill] sm:$0xff] %v3204_v45  ;;  %v1340_v45 = vsel %vm253_vm1, %v1338_v63, %v1339_v27  ;;  %v1456_v33 = vrot.slane %v1408_v38, 3  ;;  %v1411_v0 = vmul.f32 %v3005_v22, %v3146_v30  ;;  %v4537_v21 = vrot.slane %v3029_v9, 2 }
  0xf0   :  { %v136_v53 = vsel %vm131_vm0, %v4536_v1, %v135_v52  ;;  %1369 = vrot.lane.b32.xlu1 %v1337_v28, %s2306_s11  ;;  %1367 = vrot.lane.b32.xlu0 %v1335_v32, %s2306_s11  ;;  %v379_v28 = vrot.slane %v329_v15, 3  ;;  %v3240_v49 = vmul.f32 %v3209_v20, %v2925_v48  ;;  %v213_v32 = vmul.f32 %v3218_v61, %v2925_v48 }
  0xf1   :  { %v258_v52 = vsel %vm253_vm1, %v4537_v21, %v257_v6  ;;  %v189_v38 = vadd.f32 %v136_v53, %v67_v54  ;;  %v145_v46 = vrot.slane %v91_v2, 1  ;;  %v1460_v9 = vsel %vm375_vm2, %v1457_v5, %v1459_v14  ;;  %v3259_v21 = vld [vmem:[%s4463_s1 + $0x30] sm:$0xff] }
  0xf2   :  { %v3244_v27 = vpop.permute.xlu1 %950  ;;  %v3246_v63 = vpop.permute.xlu0 %948  ;;  %v1415_v15 = vmul.f32 %v3209_v20, %v3146_v30  ;;  %v1416_v6 = vmul.f32 %v3218_v61, %v3146_v30  ;;  %v1414_v54 = vmul.f32 %v3259_v21, %v3146_v30  ;;  %v1458_v2 = vsel %vm375_vm2, %v1456_v33, %v1457_v5 }
  0xf3   :  { %4538 = vst [vmem:[#allocation61_spill] sm:$0xff] %v3244_v27  ;;  %4539 = vst [vmem:[#allocation62_spill] sm:$0xff] %v3246_v63  ;;  %v1462_v14 = vrot.slane %v1412_v36, 3  ;;  %v1464_v53 = vrot.slane %v1413_v44, 3  ;;  %v267_v27 = vrot.slane %v213_v32, 2  ;;  %v3270_v60 = vmul.f32 %v3209_v20, %v2951_v7 }
  0xf4   :  { %1373 = vrot.lane.b32.xlu1 %v1342_v12, %s2306_s11  ;;  %1371 = vrot.lane.b32.xlu0 %v1340_v45, %s2306_s11  ;;  %v1461_v12 = vrot.slane %v1411_v0, 3  ;;  %v4540_v45 = vrot.slane %v3045_v31, 3  ;;  %v4543_v33 = vrot.slane %v3213_v10, 1  ;;  %v335_v31 = vmul.f32 %v3218_v61, %v2951_v7 }
  0xf5   :  { %v71_v36 = vmul.f32 %v3209_v20, %v2982_v26  ;;  %v89_v44 = vmul.f32 %v3259_v21, %v2903_v59  ;;  %v1467_v0 = vrot.slane %v1415_v15, 3  ;;  %v1466_v32 = vrot.slane %v1414_v54, 3 }
  0xf6   :  { %v380_v1 = vsel %vm375_vm2, %v4540_v45, %v379_v28  ;;  %v3272_v57 = vpop.permute.xlu1 %954  ;;  %v3274_v55 = vpop.permute.xlu0 %952  ;;  %v146_v5 = vsel %vm131_vm0, %v4543_v33, %v145_v46  ;;  %v1469_v28 = vrot.slane %v1416_v6, 3  ;;  %v3290_v46 = vld [vmem:[%s4463_s1 + $0x50] sm:$0xff]  ;;  %v1465_v33 = vsel %vm375_vm2, %v1462_v14, %v1464_v53  ;;  %v3306_v6 = vld [vmem:[%s4463_s1 + $0x48] sm:$0xff] }
  0xf7   :  { %4541 = vst [vmem:[#allocation63_spill] sm:$0xff] %v3272_v57  ;;  %4542 = vst [vmem:[#allocation64_spill] sm:$0xff] %v3274_v55  ;;  %v1418_v45 = vmul.f32 %v3290_v46, %v3146_v30  ;;  %v1463_v63 = vsel %vm375_vm2, %v1461_v12, %v1462_v14  ;;  %v1417_v54 = vmul.f32 %v3306_v6, %v3146_v30  ;;  %v387_v53 = vrot.slane %v3270_v60, 3 }
  0xf8   :  { %1498 = vrot.lane.b32.xlu1 %v1460_v9, %s2306_s11  ;;  %1496 = vrot.lane.b32.xlu0 %v1458_v2, %s2306_s11  ;;  %v3299_v9 = vld [vmem:[%s4463_s1 + $0x58] sm:$0x7]  ;;  %v311_v2 = vadd.f32 %v258_v52, %v189_v38  ;;  %v211_v14 = vmul.f32 %v3259_v21, %v2925_v48  ;;  %v333_v12 = vmul.f32 %v3259_v21, %v2951_v7  ;;  %v4546_v51 = vrot.slane %v3240_v49, 2 }
  0xf9   :  { %v1419_v15 = vmul.f32 %v3299_v9, %v3146_v30  ;;  %v389_v56 = vrot.slane %v335_v31, 3  ;;  %v193_v47 = vadd.f32 %v146_v5, %v71_v36  ;;  %v142_v42 = vrot.slane %v89_v44, 1  ;;  %v3336_v31 = vld [vmem:[%s4463_s1 + $0x70] sm:$0x7]  ;;  %v3343_v36 = vld [vmem:[%s4463_s1 + $0x60] sm:$0xff] }
  0xfa   :  { %v3315_v55 = vpop.permute.xlu1 %958  ;;  %v3317_v57 = vpop.permute.xlu0 %956  ;;  %v268_v50 = vsel %vm253_vm1, %v4546_v51, %v267_v27  ;;  %v1470_v60 = vsel %vm375_vm2, %v1467_v0, %v1469_v28  ;;  %v1468_v52 = vsel %vm375_vm2, %v1466_v32, %v1467_v0  ;;  %v1472_v38 = vrot.slane %v1418_v45, 3 }
  0xfb   :  { %4544 = vst [vmem:[#allocation65_spill] sm:$0xff] %v3315_v55  ;;  %4545 = vst [vmem:[#allocation66_spill] sm:$0xff] %v3317_v57  ;;  %v3329_v57 = vld [vmem:[%s4463_s1 + $0x68] sm:$0xff]  ;;  %v1474_v27 = vrot.slane %v1419_v15, 3  ;;  %v1471_v5 = vrot.slane %v1417_v54, 3  ;;  %v1420_v44 = vmul.f32 %v3343_v36, %v3146_v30  ;;  %v3349_v0 = vadd.f32 %v3196_v16, %v3198_v40 }
  0xfc   :  { %1502 = vrot.lane.b32.xlu1 %v1465_v33, %s2306_s11  ;;  %1500 = vrot.lane.b32.xlu0 %v1463_v63, %s2306_s11  ;;  %v1421_v51 = vmul.f32 %v3329_v57, %v3146_v30  ;;  %v1422_v63 = vmul.f32 %v3336_v31, %v3146_v30  ;;  %v3351_v28 = vadd.f32 %v380_v1, %v311_v2  ;;  %v264_v32 = vrot.slane %v211_v14, 2  ;;  %v3370_v1 = vld [vmem:[%s4463_s1 + $0x88] sm:$0x7] }
  0xfd   :  { %4547 = vst [vmem:[#allocation67_spill] sm:$0xff] %v3349_v0  ;;  %v70_v45 = vmul.f32 %v3259_v21, %v2982_v26  ;;  %v390_v54 = vsel %vm375_vm2, %v387_v53, %v389_v56  ;;  %v315_v55 = vadd.f32 %v268_v50, %v193_v47  ;;  %v4551_v41 = vrot.slane %v3213_v10, 1 }
  0xfe   :  { %4548 = vst [vmem:[#allocation68_spill] sm:$0xff] %v3351_v28  ;;  %v3355_v33 = vpop.permute.xlu1 %962  ;;  %v3357_v15 = vpop.permute.xlu0 %960  ;;  %v386_v34 = vrot.slane %v333_v12, 3  ;;  %v1477_v40 = vrot.slane %v1421_v51, 3  ;;  %v1424_v16 = vmul.f32 %v3066_v13, %v3146_v30  ;;  %v1425_v47 = vmul.f32 %v3370_v1, %v3146_v30 }
  0xff   :  { %4549 = vst [vmem:[#allocation69_spill] sm:$0xff] %v3355_v33  ;;  %4550 = vst [vmem:[#allocation70_spill] sm:$0xff] %v3357_v15  ;;  %v144_v37 = vsel %vm131_vm0, %v142_v42, %v4551_v41  ;;  %v1423_v41 = vmul.f32 %v3077_v19, %v3146_v30  ;;  %v1475_v42 = vsel %vm375_vm2, %v1472_v38, %v1474_v27  ;;  %v1479_v50 = vrot.slane %v1422_v63, 3 }
 0x100   :  { %1506 = vrot.lane.b32.xlu1 %v1470_v60, %s2306_s11  ;;  %1504 = vrot.lane.b32.xlu0 %v1468_v52, %s2306_s11  ;;  %v1473_v56 = vsel %vm375_vm2, %v1471_v5, %v1472_v38  ;;  %v1476_v10 = vrot.slane %v1420_v44, 3  ;;  %v4552_v2 = vrot.slane %v3240_v49, 2  ;;  %v192_v12 = vadd.f32 %v144_v37, %v70_v45 }
 0x101   :  { %v3383_v60 = vmul.f32 %v3290_v46, %v2903_v59  ;;  %v94_v52 = vmul.f32 %v3299_v9, %v2903_v59  ;;  %v3391_v27 = vadd.f32 %v390_v54, %v315_v55  ;;  %v388_v38 = vsel %vm375_vm2, %v386_v34, %v387_v53  ;;  %v3409_v53 = vld [vmem:[%s4463_s1 + $0xa0] sm:$0x7] }
 0x102   :  { %v266_v14 = vsel %vm253_vm1, %v264_v32, %v4552_v2  ;;  %v3387_v51 = vpop.permute.xlu1 %966  ;;  %v3389_v15 = vpop.permute.xlu0 %964  ;;  %v3396_v49 = vmul.f32 %v3290_v46, %v2925_v48  ;;  %v216_v37 = vmul.f32 %v3299_v9, %v2925_v48  ;;  %v1482_v5 = vrot.slane %v1424_v16, 3  ;;  %4556 = vst [vmem:[#allocation74_spill] sm:$0xff] %v3409_v53 }
 0x103   :  { %4553 = vst [vmem:[#allocation71_spill] sm:$0xff] %v3387_v51  ;;  %4554 = vst [vmem:[#allocation72_spill] sm:$0xff] %v3389_v15  ;;  %v1484_v63 = vrot.slane %v1425_v47, 3  ;;  %v1481_v44 = vrot.slane %v1423_v41, 3  ;;  %v1427_v55 = vmul.f32 %v3105_v17, %v3146_v30  ;;  %v1480_v32 = vsel %vm375_vm2, %v1477_v40, %v1479_v50  ;;  %v3438_v51 = vld [vmem:[%s4463_s1 + $0xb8] sm:$0x7] }
 0x104   :  { %4555 = vst [vmem:[#allocation73_spill] sm:$0xff] %v3391_v27  ;;  %1510 = vrot.lane.b32.xlu1 %v1475_v42, %s2306_s11  ;;  %1508 = vrot.lane.b32.xlu0 %v1473_v56, %s2306_s11  ;;  %v1478_v34 = vsel %vm375_vm2, %v1476_v10, %v1477_v40  ;;  %v1428_v45 = vmul.f32 %v3409_v53, %v3146_v30  ;;  %v148_v47 = vrot.slane %v3383_v60, 1  ;;  %v150_v41 = vrot.slane %v94_v52, 1 }
 0x105   :  { %v1426_v54 = vmul.f32 %v3115_v4, %v3146_v30  ;;  %v314_v16 = vadd.f32 %v266_v14, %v192_v12  ;;  %v3418_v42 = vmul.f32 %v3290_v46, %v2951_v7  ;;  %v272_v10 = vrot.slane %v216_v37, 2 }
 0x106   :  { %v3420_v40 = vpop.permute.xlu1 %970  ;;  %v3422_v56 = vpop.permute.xlu0 %968  ;;  %v338_v2 = vmul.f32 %v3299_v9, %v2951_v7  ;;  %v92_v14 = vmul.f32 %v3306_v6, %v2903_v59  ;;  %v1485_v12 = vsel %vm375_vm2, %v1482_v5, %v1484_v63  ;;  %v1483_v60 = vsel %vm375_vm2, %v1481_v44, %v1482_v5 }
 0x107   :  { %4557 = vst [vmem:[#allocation75_spill] sm:$0xff] %v3420_v40  ;;  %4558 = vst [vmem:[#allocation76_spill] sm:$0xff] %v3422_v56  ;;  %v1487_v52 = vrot.slane %v1427_v55, 3  ;;  %v1430_v15 = vmul.f32 %v3154_v39, %v3146_v30  ;;  %v1489_v50 = vrot.slane %v1428_v45, 3  ;;  %v1486_v37 = vrot.slane %v1426_v54, 3 }
 0x108   :  { %1514 = vrot.lane.b32.xlu1 %v1480_v32, %s2306_s11  ;;  %1512 = vrot.lane.b32.xlu0 %v1478_v34, %s2306_s11  ;;  %v1431_v32 = vmul.f32 %v3438_v51, %v3146_v30  ;;  %v1429_v34 = vmul.f32 %v3164_v58, %v3146_v30  ;;  %v3446_v5 = vadd.f32 %v388_v38, %v314_v16  ;;  %v394_v33 = vrot.slane %v338_v2, 3 }
 0x109   :  { %v151_v63 = vsel %vm131_vm0, %v148_v47, %v150_v41  ;;  %v73_v55 = vmul.f32 %v3290_v46, %v2982_v26  ;;  %v214_v56 = vmul.f32 %v3306_v6, %v2925_v48  ;;  %v96_v30 = vmul.f32 %v3329_v57, %v2903_v59 }
 0x10a   :  { %4559 = vst [vmem:[#allocation77_spill] sm:$0xff] %v3446_v5  ;;  %v3452_v45 = vpop.permute.xlu1 %1039  ;;  %v3454_v54 = vpop.permute.xlu0 %1037  ;;  %v97_v38 = vmul.f32 %v3336_v31, %v2903_v59  ;;  %v147_v16 = vrot.slane %v92_v14, 1  ;;  %v218_v41 = vmul.f32 %v3329_v57, %v2925_v48  ;;  %v95_v44 = vmul.f32 %v3343_v36, %v2903_v59 }
 0x10b   :  { %4560 = vst [vmem:[#allocation78_spill] sm:$0xff] %v3452_v45  ;;  %4561 = vst [vmem:[#allocation79_spill] sm:$0xff] %v3454_v54  ;;  %v1492_v2 = vrot.slane %v1430_v15, 3  ;;  %v1490_v54 = vsel %vm375_vm2, %v1487_v52, %v1489_v50  ;;  %v1488_v45 = vsel %vm375_vm2, %v1486_v37, %v1487_v52  ;;  %v1494_v40 = vrot.slane %v1431_v32, 3 }
 0x10c   :  { %1518 = vrot.lane.b32.xlu1 %v1485_v12, %s2306_s11  ;;  %1516 = vrot.lane.b32.xlu0 %v1483_v60, %s2306_s11  ;;  %v1491_v5 = vrot.slane %v1429_v34, 3  ;;  %v4562_v27 = vrot.slane %v3396_v49, 2  ;;  %v336_v29 = vmul.f32 %v3306_v6, %v2951_v7  ;;  %v72_v28 = vmul.f32 %v3306_v6, %v2982_v26 }
 0x10d   :  { %v219_v12 = vmul.f32 %v3336_v31, %v2925_v48  ;;  %v195_v60 = vadd.f32 %v151_v63, %v73_v55  ;;  %v153_v52 = vrot.slane %v96_v30, 1  ;;  %v155_v37 = vrot.slane %v97_v38, 1 }
 0x10e   :  { %v273_v14 = vsel %vm253_vm1, %v4562_v27, %v272_v10  ;;  %v3479_v15 = vpop.permute.xlu1 %1043  ;;  %v3481_v50 = vpop.permute.xlu0 %1041  ;;  %v217_v27 = vmul.f32 %v3343_v36, %v2925_v48  ;;  %v4565_v10 = vrot.slane %v3418_v42, 3  ;;  %v149_v34 = vsel %vm131_vm0, %v147_v16, %v148_v47 }
 0x10f   :  { %4563 = vst [vmem:[#allocation80_spill] sm:$0xff] %v3479_v15  ;;  %4564 = vst [vmem:[#allocation81_spill] sm:$0xff] %v3481_v50  ;;  %v269_v24 = vrot.slane %v214_v56, 2  ;;  %v152_v0 = vrot.slane %v95_v44, 1  ;;  %v275_v50 = vrot.slane %v218_v41, 2  ;;  %v1495_v63 = vsel %vm375_vm2, %v1492_v2, %v1494_v40 }
 0x110   :  { %v3488_v32 = vsel %vm375_vm2, %v4565_v10, %v394_v33  ;;  %1522 = vrot.lane.b32.xlu1 %v1490_v54, %s2306_s11  ;;  %1520 = vrot.lane.b32.xlu0 %v1488_v45, %s2306_s11  ;;  %v1493_v55 = vsel %vm375_vm2, %v1491_v5, %v1492_v2  ;;  %v3496_v30 = vstv %s3444_s10  ;;  %v277_v38 = vrot.slane %v219_v12, 2 }
 0x111   :  { %v340_v33 = vmul.f32 %v3329_v57, %v2951_v7  ;;  %v341_v47 = vmul.f32 %v3336_v31, %v2951_v7  ;;  %v75_v56 = vmul.f32 %v3329_v57, %v2982_v26  ;;  %v156_v40 = vsel %vm131_vm0, %v153_v52, %v155_v37 }
 0x112   :  { %v3504_v44 = vpop.permute.xlu1 %1047  ;;  %v3506_v45 = vpop.permute.xlu0 %1045  ;;  %v274_v54 = vrot.slane %v217_v27, 2  ;;  %v339_v5 = vmul.f32 %v3343_v36, %v2951_v7  ;;  %v74_v16 = vmul.f32 %v3343_v36, %v2982_v26  ;;  %v391_v41 = vrot.slane %v336_v29, 3 }
 0x113   :  { %4566 = vst [vmem:[#allocation82_spill] sm:$0xff] %v3504_v44  ;;  %4567 = vst [vmem:[#allocation83_spill] sm:$0xff] %v3506_v45  ;;  %v154_v2 = vsel %vm131_vm0, %v152_v0, %v153_v52  ;;  %v1562_v12 = vmul.f32 %v3025_v43, %v3496_v30  ;;  %v1561_v37 = vmul.f32 %v3018_v62, %v3496_v30  ;;  %v4568_v27 = vrot.slane %v3396_v49, 2 }
 0x114   :  { %1526 = vrot.lane.b32.xlu1 %v1495_v63, %s2306_s11  ;;  %1524 = vrot.lane.b32.xlu0 %v1493_v55, %s2306_s11  ;;  %v194_v45 = vadd.f32 %v149_v34, %v72_v28  ;;  %v3525_v29 = vmul.f32 %v3066_v13, %v2903_v59  ;;  %v100_v0 = vmul.f32 %v3370_v1, %v2903_v59  ;;  %v397_v63 = vrot.slane %v340_v33, 3  ;;  %s2307_s11 = smov 125  }
 0x115   :  { %v271_v10 = vsel %vm253_vm1, %v269_v24, %v4568_v27  ;;  %v278_v52 = vsel %vm253_vm1, %v275_v50, %v277_v38  ;;  %v399_v55 = vrot.slane %v341_v47, 3  ;;  %v197_v44 = vadd.f32 %v156_v40, %v75_v56 }
 0x116   :  { %v3530_v15 = vpop.permute.xlu1 %1051  ;;  %v3532_v11 = vpop.permute.xlu0 %1049  ;;  %v276_v49 = vsel %vm253_vm1, %v274_v54, %v275_v50  ;;  %v396_v24 = vrot.slane %v339_v5, 3  ;;  %v196_v28 = vadd.f32 %v154_v2, %v74_v16  ;;  %v3537_v34 = vmul.f32 %v3066_v13, %v2925_v48 }
 0x117   :  { %4569 = vst [vmem:[#allocation84_spill] sm:$0xff] %v3530_v15  ;;  %4570 = vst [vmem:[#allocation85_spill] sm:$0xff] %v3532_v11  ;;  %v222_v27 = vmul.f32 %v3370_v1, %v2925_v48  ;;  %v1564_v38 = vmul.f32 %v3127_v35, %v3496_v30  ;;  %v1563_v50 = vmul.f32 %v3005_v22, %v3496_v30  ;;  %v158_v56 = vrot.slane %v3525_v29, 1 }
 0x118   :  { %1595 = vrot.lane.b32.xlu1 %v1562_v12, %s2307_s11  ;;  %1593 = vrot.lane.b32.xlu0 %v1561_v37, %s2307_s11  ;;  %v317_v33 = vadd.f32 %v273_v14, %v195_v60  ;;  %v316_v47 = vadd.f32 %v271_v10, %v194_v45  ;;  %v160_v40 = vrot.slane %v100_v0, 1  ;;  %v4571_v54 = vrot.slane %v3418_v42, 3 }
 0x119   :  { %v400_v16 = vsel %vm375_vm2, %v397_v63, %v399_v55  ;;  %v319_v2 = vadd.f32 %v278_v52, %v197_v44  ;;  %v98_v12 = vmul.f32 %v3077_v19, %v2903_v59  ;;  %v398_v14 = vsel %vm375_vm2, %v396_v24, %v397_v63 }
 0x11a   :  { %v393_v5 = vsel %vm375_vm2, %v391_v41, %v4571_v54  ;;  %v3554_v37 = vpop.permute.xlu1 %1055  ;;  %v3556_v11 = vpop.permute.xlu0 %1053  ;;  %v318_v60 = vadd.f32 %v276_v49, %v196_v28  ;;  %v343_v45 = vmul.f32 %v3066_v13, %v2951_v7  ;;  %v344_v42 = vmul.f32 %v3370_v1, %v2951_v7 }
 0x11b   :  { %4572 = vst [vmem:[#allocation86_spill] sm:$0xff] %v3554_v37  ;;  %4573 = vst [vmem:[#allocation87_spill] sm:$0xff] %v3556_v11  ;;  %v280_v41 = vrot.slane %v3537_v34, 2  ;;  %v282_v10 = vrot.slane %v222_v27, 2  ;;  %v1566_v44 = vmul.f32 %v3209_v20, %v3496_v30  ;;  %v1565_v29 = vmul.f32 %v3259_v21, %v3496_v30 }
 0x11c   :  { %1599 = vrot.lane.b32.xlu1 %v1564_v38, %s2307_s11  ;;  %1597 = vrot.lane.b32.xlu0 %v1563_v50, %s2307_s11  ;;  %v3571_v0 = vadd.f32 %v3488_v32, %v317_v33  ;;  %v3573_v52 = vadd.f32 %v393_v5, %v316_v47  ;;  %v161_v63 = vsel %vm131_vm0, %v158_v56, %v160_v40  ;;  %v157_v49 = vrot.slane %v98_v12, 1 }
 0x11d   :  { %v77_v55 = vmul.f32 %v3066_v13, %v2982_v26  ;;  %v220_v24 = vmul.f32 %v3077_v19, %v2925_v48  ;;  %v342_v28 = vmul.f32 %v3077_v19, %v2951_v7  ;;  %v3584_v34 = vmul.f32 %v3105_v17, %v2903_v59 }
 0x11e   :  { %v3586_v32 = vpop.permute.xlu1 %1059  ;;  %v3588_v27 = vpop.permute.xlu0 %1057  ;;  %v3590_v38 = vadd.f32 %v400_v16, %v319_v2  ;;  %v3592_v50 = vadd.f32 %v398_v14, %v318_v60  ;;  %v402_v33 = vrot.slane %v343_v45, 3  ;;  %v103_v47 = vmul.f32 %v3409_v53, %v2903_v59 }
 0x11f   :  { %4574 = vst [vmem:[#allocation88_spill] sm:$0xff] %v3586_v32  ;;  %4575 = vst [vmem:[#allocation89_spill] sm:$0xff] %v3588_v27  ;;  %v283_v40 = vsel %vm253_vm1, %v280_v41, %v282_v10  ;;  %v404_v54 = vrot.slane %v344_v42, 3  ;;  %v1568_v5 = vmul.f32 %v3290_v46, %v3496_v30  ;;  %v1567_v16 = vmul.f32 %v3306_v6, %v3496_v30 }
 0x120   :  { %1603 = vrot.lane.b32.xlu1 %v1566_v44, %s2307_s11  ;;  %1601 = vrot.lane.b32.xlu0 %v1565_v29, %s2307_s11  ;;  %v199_v2 = vadd.f32 %v161_v63, %v77_v55  ;;  %v76_v12 = vmul.f32 %v3077_v19, %v2982_v26  ;;  %v3607_v14 = vmul.f32 %v3105_v17, %v2925_v48  ;;  %v279_v42 = vrot.slane %v220_v24, 2 }
 0x121   :  { %v225_v60 = vmul.f32 %v3409_v53, %v2925_v48  ;;  %v159_v45 = vsel %vm131_vm0, %v157_v49, %v158_v56  ;;  %v401_v10 = vrot.slane %v342_v28, 3  ;;  %v163_v44 = vrot.slane %v3584_v34, 1 }
 0x122   :  { %v3613_v29 = vpop.permute.xlu1 %1063  ;;  %v3615_v27 = vpop.permute.xlu0 %1061  ;;  %v165_v63 = vrot.slane %v103_v47, 1  ;;  %v3621_v55 = vmul.f32 %v3105_v17, %v2951_v7  ;;  %v347_v32 = vmul.f32 %v3409_v53, %v2951_v7  ;;  %v101_v56 = vmul.f32 %v3115_v4, %v2903_v59 }
 0x123   :  { %4576 = vst [vmem:[#allocation90_spill] sm:$0xff] %v3613_v29  ;;  %4577 = vst [vmem:[#allocation91_spill] sm:$0xff] %v3615_v27  ;;  %v405_v49 = vsel %vm375_vm2, %v402_v33, %v404_v54  ;;  %v1570_v24 = vmul.f32 %v3329_v57, %v3496_v30  ;;  %v1569_v28 = vmul.f32 %v3343_v36, %v3496_v30  ;;  %v285_v27 = vrot.slane %v3607_v14, 2 }
 0x124   :  { %1607 = vrot.lane.b32.xlu1 %v1568_v5, %s2307_s11  ;;  %1605 = vrot.lane.b32.xlu0 %v1567_v16, %s2307_s11  ;;  %v321_v34 = vadd.f32 %v283_v40, %v199_v2  ;;  %v198_v47 = vadd.f32 %v159_v45, %v76_v12  ;;  %v287_v29 = vrot.slane %v225_v60, 2  ;;  %v281_v11 = vsel %vm253_vm1, %v279_v42, %v280_v41 }
 0x125   :  { %v3637_v37 = vsel %vm375_vm2, %v401_v10, %v402_v33  ;;  %v79_v54 = vmul.f32 %v3105_v17, %v2982_v26  ;;  %v223_v5 = vmul.f32 %v3115_v4, %v2925_v48  ;;  %v166_v40 = vsel %vm131_vm0, %v163_v44, %v165_v63 }
 0x126   :  { %v3643_v16 = vpop.permute.xlu1 %1067  ;;  %v3645_v15 = vpop.permute.xlu0 %1065  ;;  %v409_v12 = vrot.slane %v347_v32, 3  ;;  %v162_v41 = vrot.slane %v101_v56, 1  ;;  %v3651_v33 = vmul.f32 %v3115_v4, %v2951_v7  ;;  %v1572_v14 = vmul.f32 %v3066_v13, %v3496_v30 }
 0x127   :  { %4578 = vst [vmem:[#allocation92_spill] sm:$0xff] %v3643_v16  ;;  %4579 = vst [vmem:[#allocation93_spill] sm:$0xff] %v3645_v15  ;;  %v1571_v60 = vmul.f32 %v3077_v19, %v3496_v30  ;;  %v3659_v45 = vadd.f32 %v405_v49, %v321_v34  ;;  %v3661_v42 = vadd.f32 %v281_v11, %v198_v47  ;;  %v284_v63 = vrot.slane %v223_v5, 2 }
 0x128   :  { %1611 = vrot.lane.b32.xlu1 %v1570_v24, %s2307_s11  ;;  %1609 = vrot.lane.b32.xlu0 %v1569_v28, %s2307_s11  ;;  %v3664_v32 = vsel %vm253_vm1, %v285_v27, %v287_v29  ;;  %v78_v10 = vmul.f32 %v3115_v4, %v2982_v26  ;;  %v105_v56 = vmul.f32 %v3154_v39, %v2903_v59  ;;  %v3677_v49 = vstv %s3617_s22 }
 0x129   :  { %v106_v24 = vmul.f32 %v3438_v51, %v2903_v59  ;;  %v4582_v11 = vrot.slane %v3621_v55, 3  ;;  %v3684_v34 = vadd.f32 %v166_v40, %v79_v54  ;;  %v164_v47 = vsel %vm131_vm0, %v162_v41, %v163_v44 }
 0x12a   :  { %v3672_v28 = vpop.permute.xlu1 %1192  ;;  %v3674_v2 = vpop.permute.xlu0 %1190  ;;  %v104_v5 = vmul.f32 %v3164_v58, %v2903_v59  ;;  %v1573_v54 = vmul.f32 %v3115_v4, %v3496_v30  ;;  %v228_v44 = vmul.f32 %v3438_v51, %v2925_v48  ;;  %v1659_v59 = vmul.f32 %v3025_v43, %v3677_v49 }
 0x12b   :  { %4580 = vst [vmem:[#allocation94_spill] sm:$0xff] %v3672_v28  ;;  %4581 = vst [vmem:[#allocation95_spill] sm:$0xff] %v3674_v2  ;;  %v3682_v29 = vsel %vm375_vm2, %v4582_v11, %v409_v12  ;;  %v227_v28 = vmul.f32 %v3154_v39, %v2925_v48  ;;  %v1574_v12 = vmul.f32 %v3105_v17, %v3496_v30  ;;  %v168_v11 = vrot.slane %v105_v56, 1 }
 0x12c   :  { %1615 = vrot.lane.b32.xlu1 %v1572_v14, %s2307_s11  ;;  %1613 = vrot.lane.b32.xlu0 %v1571_v60, %s2307_s11  ;;  %v1660_v40 = vmul.f32 %v3141_v25, %v3677_v49  ;;  %v1658_v41 = vmul.f32 %v3018_v62, %v3677_v49  ;;  %v286_v14 = vsel %vm253_vm1, %v284_v63, %v285_v27  ;;  %v170_v15 = vrot.slane %v106_v24, 1 }
 0x12d   :  { %v200_v60 = vadd.f32 %v164_v47, %v78_v10  ;;  %v167_v4 = vrot.slane %v104_v5, 1  ;;  %v226_v53 = vmul.f32 %v3164_v58, %v2925_v48  ;;  %v1576_v43 = vmul.f32 %v3154_v39, %v3496_v30 }
 0x12e   :  { %v3707_v2 = vpop.permute.xlu1 %1196  ;;  %v3709_v16 = vpop.permute.xlu0 %1194  ;;  %v1575_v25 = vmul.f32 %v3164_v58, %v3496_v30  ;;  %v290_v62 = vrot.slane %v227_v28, 2  ;;  %v1662_v27 = vmul.f32 %v3127_v35, %v3677_v49  ;;  %v1663_v10 = vmul.f32 %v3095_v23, %v3677_v49 }
 0x12f   :  { %4583 = vst [vmem:[#allocation96_spill] sm:$0xff] %v3709_v16  ;;  %v1661_v48 = vmul.f32 %v3005_v22, %v3677_v49  ;;  %v292_v63 = vrot.slane %v228_v44, 2  ;;  %v1707_v56 = vrot.slane %v1659_v59, 1  ;;  %v1709_v24 = vrot.slane %v1660_v40, 1 }
 0x130   :  { %1619 = vrot.lane.b32.xlu1 %v1574_v12, %s2307_s11  ;;  %1617 = vrot.lane.b32.xlu0 %v1573_v54, %s2307_s11  ;;  %v1706_v47 = vrot.slane %v1658_v41, 1  ;;  %v171_v30 = vsel %vm131_vm0, %v168_v11, %v170_v15  ;;  %v349_v28 = vmul.f32 %v3154_v39, %v2951_v7  ;;  %v350_v5 = vmul.f32 %v3438_v51, %v2951_v7 }
 0x131   :  { %v81_v35 = vmul.f32 %v3154_v39, %v2982_v26  ;;  %v169_v22 = vsel %vm131_vm0, %v167_v4, %v168_v11  ;;  %v289_v54 = vrot.slane %v226_v53, 2  ;;  %v348_v44 = vmul.f32 %v3164_v58, %v2951_v7 }
 0x132   :  { %v3732_v12 = vpop.permute.xlu1 %1200  ;;  %v3734_v23 = vpop.permute.xlu0 %1198  ;;  %v80_v15 = vmul.f32 %v3164_v58, %v2982_v26  ;;  %v1712_v59 = vrot.slane %v1662_v27, 1  ;;  %v1714_v40 = vrot.slane %v1663_v10, 1  ;;  %v1711_v41 = vrot.slane %v1661_v48, 1 }
 0x133   :  { %4584 = vst [vmem:[#allocation97_spill] sm:$0xff] %v3732_v12  ;;  %4585 = vst [vmem:[#allocation98_spill] sm:$0xff] %v3734_v23  ;;  %v1665_v12 = vmul.f32 %v3209_v20, %v3677_v49  ;;  %v1710_v23 = vsel %vm131_vm0, %v1707_v56, %v1709_v24  ;;  %v1708_v4 = vsel %vm131_vm0, %v1706_v47, %v1707_v56  ;;  %v412_v11 = vrot.slane %v349_v28, 3 }
 0x134   :  { %1623 = vrot.lane.b32.xlu1 %v1576_v43, %s2307_s11  ;;  %1621 = vrot.lane.b32.xlu0 %v1575_v25, %s2307_s11  ;;  %v1666_v7 = vmul.f32 %v3218_v61, %v3677_v49  ;;  %v1664_v26 = vmul.f32 %v3259_v21, %v3677_v49  ;;  %v293_v53 = vsel %vm253_vm1, %v290_v62, %v292_v63  ;;  %v414_v25 = vrot.slane %v350_v5, 3 }
 0x135   :  { %v203_v43 = vadd.f32 %v171_v30, %v81_v35  ;;  %v291_v48 = vsel %vm253_vm1, %v289_v54, %v290_v62  ;;  %v411_v24 = vrot.slane %v348_v44, 3  ;;  %v202_v16 = vadd.f32 %v169_v22, %v80_v15 }
 0x136   :  { %v3752_v27 = vpop.permute.xlu1 %1204  ;;  %v3754_v10 = vpop.permute.xlu0 %1202  ;;  %v1668_v56 = vmul.f32 %v3290_v46, %v3677_v49  ;;  %v1715_v63 = vsel %vm131_vm0, %v1712_v59, %v1714_v40  ;;  %v1713_v47 = vsel %vm131_vm0, %v1711_v41, %v1712_v59  ;;  %v1669_v30 = vmul.f32 %v3299_v9, %v3677_v49 }
 0x137   :  { %4586 = vst [vmem:[#allocation99_spill] sm:$0xff] %v3752_v27  ;;  %4587 = vst [vmem:[#allocation100_spill] sm:$0xff] %v3754_v10  ;;  %v1717_v28 = vrot.slane %v1665_v12, 1  ;;  %v1719_v5 = vrot.slane %v1666_v7, 1  ;;  %v1716_v35 = vrot.slane %v1664_v26, 1  ;;  %v1667_v62 = vmul.f32 %v3306_v6, %v3677_v49 }
 0x138   :  { %1748 = vrot.lane.b32.xlu1 %v1710_v23, %s2307_s11  ;;  %1746 = vrot.lane.b32.xlu0 %v1708_v4, %s2307_s11  ;;  %v323_v22 = vadd.f32 %v3664_v32, %v3684_v34  ;;  %v4588_v23 = vrot.slane %v3621_v55, 3  ;;  %v4589_v54 = vrot.slane %v3651_v33, 3  ;;  %v322_v15 = vadd.f32 %v286_v14, %v200_v60 }
 0x139   :  { %v415_v59 = vsel %vm375_vm2, %v412_v11, %v414_v25  ;;  %v325_v41 = vadd.f32 %v293_v53, %v203_v43  ;;  %v413_v4 = vsel %vm375_vm2, %v411_v24, %v412_v11  ;;  %v324_v7 = vadd.f32 %v291_v48, %v202_v16  ;;  %v4592_v25 = vld [vmem:[#allocation8_spill] sm:$0xff] }
 0x13a   :  { %v408_v44 = vsel %vm375_vm2, %v4589_v54, %v4588_v23  ;;  %v3775_v40 = vpop.permute.xlu1 %1208  ;;  %v3777_v12 = vpop.permute.xlu0 %1206  ;;  %v1722_v26 = vrot.slane %v1668_v56, 1  ;;  %v1724_v55 = vrot.slane %v1669_v30, 1  ;;  %v1671_v33 = vmul.f32 %v3329_v57, %v3677_v49  ;;  %v4597_v30 = vld [vmem:[#allocation68_spill] sm:$0xff] }
 0x13b   :  { %4590 = vst [vmem:[#allocation101_spill] sm:$0xff] %v3775_v40  ;;  %4591 = vst [vmem:[#allocation102_spill] sm:$0xff] %v3777_v12  ;;  %v1672_v32 = vmul.f32 %v3336_v31, %v3677_v49  ;;  %v1670_v34 = vmul.f32 %v3343_v36, %v3677_v49  ;;  %v442_v14 = vadd.f32 %v3637_v37, %v3661_v42  ;;  %v1721_v53 = vrot.slane %v1667_v62, 1  ;;  %v4596_v37 = vld [vmem:[#allocation9_spill] sm:$0xff]  ;;  %v4638_v12 = vld [vmem:[#allocation43_spill] sm:$0xff] }
 0x13c   :  { %1752 = vrot.lane.b32.xlu1 %v1715_v63, %s2307_s11  ;;  %1750 = vrot.lane.b32.xlu0 %v1713_v47, %s2307_s11  ;;  %v1720_v16 = vsel %vm131_vm0, %v1717_v28, %v1719_v5  ;;  %v1718_v60 = vsel %vm131_vm0, %v1716_v35, %v1717_v28  ;;  %v531_v11 = vadd.f32 %v2717_v8, %v3168_v18  ;;  %v4595_v47 = vld [vmem:[#allocation67_spill] sm:$0xff]  ;;  %v4598_v5 = vld [vmem:[#allocation10_spill] sm:$0xff]  ;;  %v1727_v18 = vrot.slane %v1671_v33, 1  ;;  %v4603_v33 = vld [vmem:[#allocation13_spill] sm:$0xff] }
 0x13d   :  { %v529_v43 = vadd.f32 %v4592_v25, %v3176_v3  ;;  %v445_v48 = vadd.f32 %v3682_v29, %v323_v22  ;;  %v444_v24 = vadd.f32 %v408_v44, %v322_v15  ;;  %v532_v42 = vadd.f32 %v4596_v37, %v4595_v47  ;;  %v4599_v15 = vld [vmem:[#allocation73_spill] sm:$0xff] }
 0x13e   :  { %v3797_v56 = vpop.permute.xlu1 %1212  ;;  %v3799_v63 = vpop.permute.xlu0 %1210  ;;  %v530_v28 = vadd.f32 %v4598_v5, %v4597_v30  ;;  %v447_v35 = vadd.f32 %v415_v59, %v325_v41  ;;  %v446_v62 = vadd.f32 %v413_v4, %v324_v7  ;;  %v1725_v8 = vsel %vm131_vm0, %v1722_v26, %v1724_v55  ;;  %v4600_v59 = vld [vmem:[#allocation11_spill] sm:$0xff]  ;;  %v4601_v4 = vld [vmem:[#allocation77_spill] sm:$0xff]  ;;  %v4602_v7 = vld [vmem:[#allocation12_spill] sm:$0xff] }
 0x13f   :  { %4593 = vst [vmem:[#allocation8_spill] sm:$0xff] %v3797_v56  ;;  %4594 = vst [vmem:[#allocation103_spill] sm:$0xff] %v3799_v63  ;;  %v1729_v3 = vrot.slane %v1672_v32, 1  ;;  %v1726_v29 = vrot.slane %v1670_v34, 1  ;;  %v1723_v22 = vsel %vm131_vm0, %v1721_v53, %v1722_v26  ;;  %v1674_v23 = vmul.f32 %v3066_v13, %v3677_v49  ;;  %v4604_v26 = vld [vmem:[#allocation14_spill] sm:$0xff]  ;;  %v4608_v53 = vld [vmem:[#allocation16_spill] sm:$0xff] }
 0x140   :  { %1756 = vrot.lane.b32.xlu1 %v1720_v16, %s2307_s11  ;;  %1754 = vrot.lane.b32.xlu0 %v1718_v60, %s2307_s11  ;;  %v1675_v54 = vmul.f32 %v3370_v1, %v3677_v49  ;;  %v1673_v44 = vmul.f32 %v3077_v19, %v3677_v49  ;;  %v534_v41 = vadd.f32 %v4600_v59, %v4599_v15  ;;  %v4607_v19 = vld [vmem:[#allocation15_spill] sm:$0xff]  ;;  %v4609_v47 = vld [vmem:[#allocation17_spill] sm:$0xff]  ;;  %v4610_v5 = vld [vmem:[#allocation74_spill] sm:$0xff] }
 0x141   :  { %v533_v55 = vadd.f32 %v4602_v7, %v4601_v4  ;;  %v536_v32 = vadd.f32 %v4603_v33, %v3571_v0  ;;  %v535_v34 = vadd.f32 %v4604_v26, %v3573_v52  ;;  %v538_v60 = vadd.f32 %v4607_v19, %v3590_v38  ;;  %v4611_v4 = vld [vmem:[#allocation53_spill] sm:$0xff]  ;;  %v4612_v7 = vld [vmem:[#allocation18_spill] sm:$0xff]  ;;  %v4634_v63 = vld [vmem:[#allocation39_spill] sm:$0xff] }
 0x142   :  { %v3823_v16 = vpop.permute.xlu1 %1216  ;;  %v3825_v13 = vpop.permute.xlu0 %1214  ;;  %v537_v25 = vadd.f32 %v4608_v53, %v3592_v50  ;;  %v540_v37 = vadd.f32 %v4609_v47, %v3659_v45  ;;  %v1677_v0 = vmul.f32 %v3105_v17, %v3677_v49  ;;  %v1730_v52 = vsel %vm131_vm0, %v1727_v18, %v1729_v3  ;;  %v4613_v17 = vld [vmem:[#allocation19_spill] sm:$0xff] }
 0x143   :  { %4605 = vst [vmem:[#allocation67_spill] sm:$0xff] %v3823_v16  ;;  %4606 = vst [vmem:[#allocation9_spill] sm:$0xff] %v3825_v13  ;;  %v1728_v30 = vsel %vm131_vm0, %v1726_v29, %v1727_v18  ;;  %v1678_v38 = vmul.f32 %v4610_v5, %v3677_v49  ;;  %v1732_v15 = vrot.slane %v1674_v23, 1  ;;  %v1734_v59 = vrot.slane %v1675_v54, 1  ;;  %v4616_v29 = vld [vmem:[#allocation22_spill] sm:$0xff]  ;;  %v4617_v23 = vld [vmem:[#allocation23_spill] sm:$0xff] }
 0x144   :  { %1760 = vrot.lane.b32.xlu1 %v1725_v8, %s2307_s11  ;;  %1758 = vrot.lane.b32.xlu0 %v1723_v22, %s2307_s11  ;;  %v1731_v50 = vrot.slane %v1673_v44, 1  ;;  %v1676_v45 = vmul.f32 %v4611_v4, %v3677_v49  ;;  %v539_v33 = vadd.f32 %v4612_v7, %v442_v14  ;;  %v542_v26 = vadd.f32 %v4613_v17, %v445_v48  ;;  %v4614_v8 = vld [vmem:[#allocation20_spill] sm:$0xff]  ;;  %v4615_v22 = vld [vmem:[#allocation21_spill] sm:$0xff] }
 0x145   :  { %v541_v19 = vadd.f32 %v4614_v8, %v444_v24  ;;  %v544_v53 = vadd.f32 %v4615_v22, %v447_v35  ;;  %v543_v47 = vadd.f32 %v4616_v29, %v446_v62  ;;  %v683_v54 = vadd.f32 %v4617_v23, %v530_v28  ;;  %v4618_v44 = vld [vmem:[#allocation24_spill] sm:$0xff]  ;;  %v4619_v62 = vld [vmem:[#allocation25_spill] sm:$0xff] }
 0x146   :  { %v3849_v3 = vpop.permute.xlu1 %1220  ;;  %v3851_v18 = vpop.permute.xlu0 %1218  ;;  %v682_v13 = vadd.f32 %v4618_v44, %v529_v43  ;;  %v1737_v16 = vrot.slane %v1677_v0, 1  ;;  %v1739_v14 = vrot.slane %v1678_v38, 1  ;;  %v1680_v48 = vmul.f32 %v3154_v39, %v3677_v49  ;;  %v4622_v17 = vld [vmem:[#allocation28_spill] sm:$0xff] }
 0x147   :  { %v1681_v24 = vmul.f32 %v3438_v51, %v3677_v49  ;;  %v1679_v35 = vmul.f32 %v3164_v58, %v3677_v49  ;;  %v685_v28 = vadd.f32 %v4619_v62, %v532_v42  ;;  %v1735_v43 = vsel %vm131_vm0, %v1732_v15, %v1734_v59  ;;  %v4623_v58 = vld [vmem:[#allocation29_spill] sm:$0xff]  ;;  %v4624_v42 = vld [vmem:[#allocation30_spill] sm:$0xff]  ;;  %v4625_v59 = vld [vmem:[#allocation31_spill] sm:$0xff] }
 0x148   :  { %1764 = vrot.lane.b32.xlu1 %v1730_v52, %s2307_s11  ;;  %1762 = vrot.lane.b32.xlu0 %v1728_v30, %s2307_s11  ;;  %v1733_v0 = vsel %vm131_vm0, %v1731_v50, %v1732_v15  ;;  %v1736_v4 = vrot.slane %v1676_v45, 1  ;;  %v4620_v52 = vld [vmem:[#allocation26_spill] sm:$0xff]  ;;  %v4621_v30 = vld [vmem:[#allocation27_spill] sm:$0xff]  ;;  %v686_v8 = vadd.f32 %v4622_v17, %v533_v55  ;;  %v3875_v29 = vstv %s3827_s12  ;;  %v4626_v15 = vld [vmem:[#allocation32_spill] sm:$0xff] }
 0x149   :  { %v684_v7 = vadd.f32 %v4620_v52, %v531_v11  ;;  %v687_v38 = vadd.f32 %v4621_v30, %v534_v41  ;;  %v689_v49 = vadd.f32 %v4623_v58, %v536_v32  ;;  %v688_v23 = vadd.f32 %v4624_v42, %v535_v34  ;;  %v3888_v32 = vld [vmem:[%s4463_s1 + $0x8] sm:$0xff]  ;;  %v4631_v52 = vld [vmem:[#allocation36_spill] sm:$0xff] }
 0x14a   :  { %v3870_v39 = vpop.permute.xlu1 %1345  ;;  %v3872_v22 = vpop.permute.xlu0 %1343  ;;  %v691_v44 = vadd.f32 %v4625_v59, %v538_v60  ;;  %v690_v50 = vadd.f32 %v4626_v15, %v537_v25  ;;  %v1740_v11 = vsel %vm131_vm0, %v1737_v16, %v1739_v14  ;;  %v1742_v41 = vrot.slane %v1680_v48, 1  ;;  %v4627_v60 = vld [vmem:[#allocation56_spill] sm:$0xff]  ;;  %v4632_v42 = vld [vmem:[#allocation37_spill] sm:$0xff]  ;;  %v4633_v15 = vld [vmem:[#allocation38_spill] sm:$0xff] }
 0x14b   :  { %v1744_v55 = vrot.slane %v1681_v24, 1  ;;  %v1741_v45 = vrot.slane %v1679_v35, 1  ;;  %v1738_v62 = vsel %vm131_vm0, %v1736_v4, %v1737_v16  ;;  %v1812_v34 = vmul.f32 %v3888_v32, %v3875_v29  ;;  %v3897_v14 = vld [vmem:[%s4463_s1] sm:$0xff]  ;;  %v4628_v16 = vld [vmem:[#allocation33_spill] sm:$0xff]  ;;  %v4629_v35 = vld [vmem:[#allocation34_spill] sm:$0xff] }
 0x14c   :  { %1768 = vrot.lane.b32.xlu1 %v1735_v43, %s2307_s11  ;;  %1766 = vrot.lane.b32.xlu0 %v1733_v0, %s2307_s11  ;;  %v1813_v25 = vmul.f32 %v4627_v60, %v3875_v29  ;;  %v1811_v48 = vmul.f32 %v3897_v14, %v3875_v29  ;;  %v693_v24 = vadd.f32 %v4628_v16, %v540_v37  ;;  %v4630_v0 = vld [vmem:[#allocation35_spill] sm:$0xff]  ;;  %v3921_v37 = vld [vmem:[%s4463_s1 + $0x20] sm:$0xff] }
 0x14d   :  { %v692_v43 = vadd.f32 %v4629_v35, %v539_v33  ;;  %v695_v4 = vadd.f32 %v4630_v0, %v542_v26  ;;  %v694_v30 = vadd.f32 %v4631_v52, %v541_v19  ;;  %v3910_v59 = vadd.f32 %v4632_v42, %v544_v53  ;;  %v3931_v19 = vld [vmem:[%s4463_s1 + $0x28] sm:$0x7]  ;;  %v3938_v53 = vld [vmem:[%s4463_s1 + $0x18] sm:$0xff]  ;;  %v4635_v16 = vld [vmem:[#allocation40_spill] sm:$0xff] }
 0x14e   :  { %v3905_v17 = vpop.permute.xlu1 %1349  ;;  %v3907_v58 = vpop.permute.xlu0 %1347  ;;  %v3913_v60 = vadd.f32 %v4633_v15, %v543_v47  ;;  %v3916_v56 = vadd.f32 %v4634_v63, %v683_v54  ;;  %v1815_v33 = vmul.f32 %v3921_v37, %v3875_v29  ;;  %v1745_v26 = vsel %vm131_vm0, %v1742_v41, %v1744_v55  ;;  %v4636_v0 = vld [vmem:[#allocation41_spill] sm:$0xff]  ;;  %v4637_v42 = vld [vmem:[#allocation42_spill] sm:$0xff] }
 0x14f   :  { %v1816_v63 = vmul.f32 %v3931_v19, %v3875_v29  ;;  %v1814_v47 = vmul.f32 %v3938_v53, %v3875_v29  ;;  %v1743_v54 = vsel %vm131_vm0, %v1741_v45, %v1742_v41  ;;  %v1862_v55 = vrot.slane %v1813_v25, 2  ;;  %v4639_v41 = vld [vmem:[#allocation44_spill] sm:$0xff] }
 0x150   :  { %1772 = vrot.lane.b32.xlu1 %v1740_v11, %s2307_s11  ;;  %1770 = vrot.lane.b32.xlu0 %v1738_v62, %s2307_s11  ;;  %v1860_v11 = vrot.slane %v1812_v34, 2  ;;  %v1859_v62 = vrot.slane %v1811_v48, 2  ;;  %v3944_v35 = vadd.f32 %v4635_v16, %v682_v13  ;;  %v3947_v52 = vadd.f32 %v4636_v0, %v685_v28  ;;  %v4640_v34 = vld [vmem:[#allocation45_spill] sm:$0xff]  ;;  %v4641_v13 = vld [vmem:[#allocation46_spill] sm:$0xff]  ;;  %v4642_v16 = vld [vmem:[#allocation47_spill] sm:$0xff] }
 0x151   :  { %v3950_v15 = vadd.f32 %v4637_v42, %v684_v7  ;;  %v3953_v40 = vadd.f32 %v4638_v12, %v687_v38  ;;  %v3960_v45 = vadd.f32 %v4639_v41, %v686_v8  ;;  %v3963_v25 = vadd.f32 %v4640_v34, %v689_v49 }
 0x152   :  { %v3955_v10 = vpop.permute.xlu1 %1353  ;;  %v3957_v27 = vpop.permute.xlu0 %1351  ;;  %v3966_v48 = vadd.f32 %v4641_v13, %v688_v23  ;;  %v1865_v28 = vrot.slane %v1815_v33, 2  ;;  %v1867_v12 = vrot.slane %v1816_v63, 2  ;;  %v1864_v7 = vrot.slane %v1814_v47, 2  ;;  %v4644_v63 = vld [vmem:[#allocation49_spill] sm:$0xff] }
 0x153   :  { %v1818_v38 = vmul.f32 %v3209_v20, %v3875_v29  ;;  %v1819_v8 = vmul.f32 %v3218_v61, %v3875_v29  ;;  %v3975_v0 = vadd.f32 %v4642_v16, %v691_v44  ;;  %v1863_v49 = vsel %vm253_vm1, %v1860_v11, %v1862_v55 }
 0x154   :  { %1776 = vrot.lane.b32.xlu1 %v1745_v26, %s2307_s11  ;;  %1774 = vrot.lane.b32.xlu0 %v1743_v54, %s2307_s11  ;;  %v1861_v23 = vsel %vm253_vm1, %v1859_v62, %v1860_v11  ;;  %v1817_v33 = vmul.f32 %v3259_v21, %v3875_v29  ;;  %v4643_v26 = vld [vmem:[#allocation48_spill] sm:$0xff]  ;;  %v3985_v47 = vadd.f32 %v4644_v63, %v693_v24  ;;  %v4645_v11 = vld [vmem:[#allocation50_spill] sm:$0xff]  ;;  %v4646_v21 = vld [vmem:[#allocation51_spill] sm:$0xff] }
 0x155   :  { %v3982_v54 = vadd.f32 %v4643_v26, %v690_v50  ;;  %v1821_v61 = vmul.f32 %v3290_v46, %v3875_v29  ;;  %v1822_v44 = vmul.f32 %v3299_v9, %v3875_v29  ;;  %v3996_v55 = vadd.f32 %v4645_v11, %v692_v43  ;;  %v4647_v50 = vld [vmem:[#allocation52_spill] sm:$0xff]  ;;  %v4036_v26 = vld [vmem:[%s4463_s1 + $0x78] sm:$0xff] }
 0x156   :  { %v3987_v20 = vpop.permute.xlu1 %1357  ;;  %v3989_v42 = vpop.permute.xlu0 %1355  ;;  %v3999_v62 = vadd.f32 %v4646_v21, %v695_v4  ;;  %v4002_v41 = vadd.f32 %v4647_v50, %v694_v30  ;;  %v1820_v24 = vmul.f32 %v3306_v6, %v3875_v29  ;;  %v1868_v46 = vsel %vm253_vm1, %v1865_v28, %v1867_v12  ;;  %4651 = vst [vmem:[#allocation10_spill] sm:$0xff] %v4036_v26 }
 0x157   :  { %v1866_v9 = vsel %vm253_vm1, %v1864_v7, %v1865_v28  ;;  %v1870_v34 = vrot.slane %v1818_v38, 2  ;;  %v1872_v43 = vrot.slane %v1819_v8, 2  ;;  %v1869_v13 = vrot.slane %v1817_v33, 2  ;;  %v4023_v28 = vld [vmem:[%s4463_s1 + $0x80] sm:$0xff]  ;;  %v4649_v7 = vld [vmem:[#allocation54_spill] sm:$0xff]  ;;  %v4650_v38 = vld [vmem:[#allocation55_spill] sm:$0xff] }
 0x158   :  { %1901 = vrot.lane.b32.xlu1 %v1863_v49, %s2307_s11  ;;  %1899 = vrot.lane.b32.xlu0 %v1861_v23, %s2307_s11  ;;  %v1824_v4 = vmul.f32 %v3329_v57, %v3875_v29  ;;  %v1825_v30 = vmul.f32 %v3336_v31, %v3875_v29  ;;  %v1823_v6 = vmul.f32 %v3343_v36, %v3875_v29  ;;  %v1875_v23 = vrot.slane %v1821_v61, 2 }
 0x159   :  { %v1877_v12 = vrot.slane %v1822_v44, 2  ;;  %4648 = vst [vmem:[#allocation68_spill] sm:$0xff] %v4023_v28  ;;  %v1827_v57 = vmul.f32 %v4023_v28, %v3875_v29  ;;  %v1828_v31 = vmul.f32 %v3370_v1, %v3875_v29  ;;  %v850_v36 = vadd.f32 %v4649_v7, %v3910_v59  ;;  %v4048_v59 = vld [vmem:[%s4463_s1 + $0x98] sm:$0xff] }
 0x15a   :  { %v4016_v16 = vpop.permute.xlu1 %1361  ;;  %v4018_v49 = vpop.permute.xlu0 %1359  ;;  %v849_v8 = vadd.f32 %v4650_v38, %v3913_v60  ;;  %v1874_v33 = vrot.slane %v1820_v24, 2  ;;  %v1826_v63 = vmul.f32 %v4036_v26, %v3875_v29  ;;  %v1873_v1 = vsel %vm253_vm1, %v1870_v34, %v1872_v43  ;;  %4652 = vst [vmem:[#allocation73_spill] sm:$0xff] %v4048_v59  ;;  %v4063_v38 = vld [vmem:[%s4463_s1 + $0x90] sm:$0xff] }
 0x15b   :  { %v1830_v60 = vmul.f32 %v4048_v59, %v3875_v29  ;;  %v1831_v61 = vmul.f32 %v4610_v5, %v3875_v29  ;;  %v1871_v44 = vsel %vm253_vm1, %v1869_v13, %v1870_v34  ;;  %v1880_v11 = vrot.slane %v1824_v4, 2  ;;  %4653 = vst [vmem:[#allocation11_spill] sm:$0xff] %v4063_v38  ;;  %v4654_v34 = vld [vmem:[#allocation57_spill] sm:$0xff]  ;;  %v4655_v4 = vld [vmem:[#allocation58_spill] sm:$0xff] }
 0x15c   :  { %1905 = vrot.lane.b32.xlu1 %v1868_v46, %s2307_s11  ;;  %1903 = vrot.lane.b32.xlu0 %v1866_v9, %s2307_s11  ;;  %v1882_v21 = vrot.slane %v1825_v30, 2  ;;  %v1879_v50 = vrot.slane %v1823_v6, 2  ;;  %v1878_v9 = vsel %vm253_vm1, %v1875_v23, %v1877_v12  ;;  %v1885_v43 = vrot.slane %v1827_v57, 2 }
 0x15d   :  { %v1887_v7 = vrot.slane %v1828_v31, 2  ;;  %v1829_v5 = vmul.f32 %v4063_v38, %v3875_v29  ;;  %v989_v13 = vadd.f32 %v4654_v34, %v3916_v56  ;;  %v988_v30 = vadd.f32 %v4655_v4, %v3944_v35  ;;  %v4077_v31 = vld [vmem:[%s4463_s1 + $0xb0] sm:$0xff]  ;;  %v4660_v4 = vld [vmem:[#allocation60_spill] sm:$0xff] }
 0x15e   :  { %v4055_v24 = vpop.permute.xlu1 %1365  ;;  %v4057_v46 = vpop.permute.xlu0 %1363  ;;  %v1876_v6 = vsel %vm253_vm1, %v1874_v33, %v1875_v23  ;;  %v1884_v59 = vrot.slane %v1826_v63, 2  ;;  %v1890_v12 = vrot.slane %v1830_v60, 2  ;;  %v1892_v57 = vrot.slane %v1831_v61, 2  ;;  %4656 = vst [vmem:[#allocation77_spill] sm:$0xff] %v4077_v31  ;;  %v4657_v23 = vld [vmem:[#allocation75_spill] sm:$0xff]  ;;  %v4658_v63 = vld [vmem:[#allocation76_spill] sm:$0xff] }
 0x15f   :  { %v4081_v56 = vmul.f32 %v4077_v31, %v3875_v29  ;;  %v1834_v35 = vmul.f32 %v3438_v51, %v3875_v29  ;;  %v1003_v33 = vadd.f32 %v4657_v23, %v850_v36  ;;  %v1883_v60 = vsel %vm253_vm1, %v1880_v11, %v1882_v21  ;;  %v4661_v36 = vld [vmem:[#allocation92_spill] sm:$0xff] }
 0x160   :  { %1909 = vrot.lane.b32.xlu1 %v1873_v1, %s2307_s11  ;;  %1907 = vrot.lane.b32.xlu0 %v1871_v44, %s2307_s11  ;;  %v1002_v1 = vadd.f32 %v4658_v63, %v849_v8  ;;  %v1881_v61 = vsel %vm253_vm1, %v1879_v50, %v1880_v11  ;;  %v4659_v44 = vld [vmem:[#allocation59_spill] sm:$0xff]  ;;  %v990_v38 = vadd.f32 %v4660_v4, %v3950_v15  ;;  %v1889_v28 = vrot.slane %v1829_v5, 2  ;;  %v4662_v8 = vld [vmem:[#allocation93_spill] sm:$0xff] }
 0x161   :  { %v991_v34 = vadd.f32 %v4659_v44, %v3947_v52  ;;  %v1888_v51 = vsel %vm253_vm1, %v1885_v43, %v1887_v7  ;;  %v1100_v23 = vadd.f32 %v4661_v36, %v1003_v33  ;;  %v1886_v21 = vsel %vm253_vm1, %v1884_v59, %v1885_v43  ;;  %v4111_v7 = vld [vmem:[%s4463_s1 + $0xa8] sm:$0xff]  ;;  %v4663_v59 = vld [vmem:[#allocation78_spill] sm:$0xff]  ;;  %v4664_v33 = vld [vmem:[#allocation79_spill] sm:$0xff] }
 0x162   :  { %v4093_v26 = vpop.permute.xlu1 %1369  ;;  %v4095_v31 = vpop.permute.xlu0 %1367  ;;  %v1099_v63 = vadd.f32 %v4662_v8, %v1002_v1  ;;  %v4102_v11 = vstv %s4040_s27  ;;  %v1893_v52 = vsel %vm253_vm1, %v1890_v12, %v1892_v57  ;;  %v1895_v15 = vrot.slane %v4081_v56, 2  ;;  %v4665_v57 = vld [vmem:[#allocation61_spill] sm:$0xff] }
 0x163   :  { %v1897_v50 = vrot.slane %v1834_v35, 2  ;;  %v1832_v5 = vmul.f32 %v4111_v7, %v3875_v29  ;;  %v1086_v43 = vadd.f32 %v4663_v59, %v989_v13  ;;  %v1085_v1 = vadd.f32 %v4664_v33, %v988_v30  ;;  %v2255_v29 = vld [vmem:[%s4463_s1 + $0x10] sm:$0x7] }
 0x164   :  { %1913 = vrot.lane.b32.xlu1 %v1878_v9, %s2307_s11  ;;  %1911 = vrot.lane.b32.xlu0 %v1876_v6, %s2307_s11  ;;  %v1253_v9 = vadd.f32 %v3849_v3, %v1100_v23  ;;  %v1252_v6 = vadd.f32 %v3851_v18, %v1099_v63  ;;  %v993_v56 = vadd.f32 %v4665_v57, %v3953_v40  ;;  %v4666_v3 = vld [vmem:[#allocation94_spill] sm:$0xff]  ;;  %v4667_v18 = vld [vmem:[#allocation95_spill] sm:$0xff] }
 0x165   :  { %v1891_v4 = vsel %vm253_vm1, %v1889_v28, %v1890_v12  ;;  %v4124_v36 = vmul.f32 %v3888_v32, %v4102_v11  ;;  %v1966_v13 = vmul.f32 %v2255_v29, %v4102_v11  ;;  %v1239_v30 = vadd.f32 %v4666_v3, %v1086_v43  ;;  %v4668_v28 = vld [vmem:[#allocation62_spill] sm:$0xff]  ;;  %v4669_v43 = vld [vmem:[#allocation80_spill] sm:$0xff]  ;;  %v4674_v3 = vld [vmem:[#allocation83_spill] sm:$0xff] }
 0x166   :  { %v1374_v35 = vpop.permute.xlu1 %1373  ;;  %v1372_v44 = vpop.permute.xlu0 %1371  ;;  %v1238_v23 = vadd.f32 %v4667_v18, %v1085_v1  ;;  %v992_v12 = vadd.f32 %v4668_v28, %v3960_v45  ;;  %v1898_v32 = vsel %vm253_vm1, %v1895_v15, %v1897_v50  ;;  %v1894_v63 = vrot.slane %v1832_v5, 2  ;;  %v4670_v1 = vld [vmem:[#allocation81_spill] sm:$0xff] }
 0x167   :  { %v4132_v8 = vadd.f32 %v1374_v35, %v1253_v9  ;;  %v4134_v40 = vadd.f32 %v1372_v44, %v1252_v6  ;;  %v1964_v59 = vmul.f32 %v3897_v14, %v4102_v11  ;;  %v1088_v33 = vadd.f32 %v4669_v43, %v991_v34  ;;  %v4671_v34 = vld [vmem:[#allocation96_spill] sm:$0xff] }
 0x168   :  { %1917 = vrot.lane.b32.xlu1 %v1883_v60, %s2307_s11  ;;  %1915 = vrot.lane.b32.xlu0 %v1881_v61, %s2307_s11  ;;  %v1087_v9 = vadd.f32 %v4670_v1, %v990_v38  ;;  %v1392_v6 = vadd.f32 %v3870_v39, %v1239_v30  ;;  %v1391_v57 = vadd.f32 %v3872_v22, %v1238_v23  ;;  %v2013_v60 = vrot.slane %v4124_v36, 3  ;;  %v4672_v22 = vld [vmem:[#allocation63_spill] sm:$0xff] }
 0x169   :  { %v2015_v44 = vrot.slane %v1966_v13, 3  ;;  %v1968_v61 = vmul.f32 %v3921_v37, %v4102_v11  ;;  %v1969_v50 = vmul.f32 %v3931_v19, %v4102_v11  ;;  %v1241_v14 = vadd.f32 %v3707_v2, %v1088_v33  ;;  %v4673_v2 = vld [vmem:[#allocation82_spill] sm:$0xff] }
 0x16a   :  { %v1499_v35 = vpop.permute.xlu1 %1498  ;;  %v1497_v45 = vpop.permute.xlu0 %1496  ;;  %v1240_v5 = vadd.f32 %v4671_v34, %v1087_v9  ;;  %v995_v29 = vadd.f32 %v4672_v22, %v3963_v25  ;;  %v1896_v37 = vsel %vm253_vm1, %v1894_v63, %v1895_v15  ;;  %v2012_v36 = vrot.slane %v1964_v59, 3  ;;  %v4675_v25 = vld [vmem:[#allocation64_spill] sm:$0xff]  ;;  %v4676_v59 = vld [vmem:[#allocation97_spill] sm:$0xff] }
 0x16b   :  { %v4154_v38 = vadd.f32 %v1499_v35, %v1392_v6  ;;  %v4156_v39 = vadd.f32 %v1497_v45, %v1391_v57  ;;  %v1967_v19 = vmul.f32 %v3938_v53, %v4102_v11  ;;  %v1090_v13 = vadd.f32 %v4673_v2, %v993_v56  ;;  %v4677_v53 = vld [vmem:[#allocation98_spill] sm:$0xff]  ;;  %v2257_v9 = vld [vmem:[%s4463_s1 + $0x40] sm:$0x7]  ;;  %v4679_v45 = vld [vmem:[#allocation85_spill] sm:$0xff] }
 0x16c   :  { %1921 = vrot.lane.b32.xlu1 %v1888_v51, %s2307_s11  ;;  %1919 = vrot.lane.b32.xlu0 %v1886_v21, %s2307_s11  ;;  %v1089_v30 = vadd.f32 %v4674_v3, %v992_v12  ;;  %v1394_v18 = vadd.f32 %v3905_v17, %v1241_v14  ;;  %v1393_v23 = vadd.f32 %v3907_v58, %v1240_v5  ;;  %v2018_v15 = vrot.slane %v1968_v61, 3  ;;  %v2256_v58 = vld [vmem:[%s4463_s1 + $0x38] sm:$0xff]  ;;  %v2258_v57 = vld [vmem:[%s4463_s1 + $0x30] sm:$0xff]  ;;  %v4680_v14 = vld [vmem:[#allocation65_spill] sm:$0xff] }
 0x16d   :  { %v994_v28 = vadd.f32 %v4675_v25, %v3966_v48  ;;  %v2016_v21 = vsel %vm375_vm2, %v2013_v60, %v2015_v44  ;;  %v2020_v63 = vrot.slane %v1969_v50, 3  ;;  %v1243_v33 = vadd.f32 %v4676_v59, %v1090_v13  ;;  %v4681_v5 = vld [vmem:[#allocation66_spill] sm:$0xff] }
 0x16e   :  { %v1503_v51 = vpop.permute.xlu1 %1502  ;;  %v1501_v43 = vpop.permute.xlu0 %1500  ;;  %v1242_v1 = vadd.f32 %v4677_v53, %v1089_v30  ;;  %v2017_v17 = vrot.slane %v1967_v19, 3  ;;  %v1971_v48 = vmul.f32 %v2256_v58, %v4102_v11  ;;  %v1972_v6 = vmul.f32 %v2257_v9, %v4102_v11  ;;  %v4682_v30 = vld [vmem:[#allocation99_spill] sm:$0xff] }
 0x16f   :  { %v4174_v56 = vadd.f32 %v1503_v51, %v1394_v18  ;;  %v4176_v12 = vadd.f32 %v1501_v43, %v1393_v23  ;;  %v1091_v44 = vadd.f32 %v4679_v45, %v994_v28  ;;  %v1396_v61 = vadd.f32 %v3955_v10, %v1243_v33  ;;  %v4683_v18 = vld [vmem:[#allocation100_spill] sm:$0xff]  ;;  %v4685_v51 = vld [vmem:[#allocation87_spill] sm:$0xff]  ;;  %v4686_v33 = vld [vmem:[#allocation69_spill] sm:$0xff] }
 0x170   :  { %1925 = vrot.lane.b32.xlu1 %v1893_v52, %s2307_s11  ;;  %1923 = vrot.lane.b32.xlu0 %v1891_v4, %s2307_s11  ;;  %v1970_v52 = vmul.f32 %v2258_v57, %v4102_v11  ;;  %v4678_v4 = vld [vmem:[#allocation84_spill] sm:$0xff]  ;;  %v1395_v50 = vadd.f32 %v3957_v27, %v1242_v1  ;;  %v997_v34 = vadd.f32 %v4680_v14, %v3975_v0  ;;  %v2023_v0 = vrot.slane %v1971_v48, 3  ;;  %v4688_v48 = vld [vmem:[#allocation101_spill] sm:$0xff] }
 0x171   :  { %v1092_v35 = vadd.f32 %v4678_v4, %v995_v29  ;;  %v996_v22 = vadd.f32 %v4681_v5, %v3982_v54  ;;  %v2014_v13 = vsel %vm375_vm2, %v2012_v36, %v2013_v60  ;;  %v2021_v3 = vsel %vm375_vm2, %v2018_v15, %v2020_v63  ;;  %v4684_v60 = vld [vmem:[#allocation86_spill] sm:$0xff]  ;;  %v4692_v5 = vld [vmem:[#allocation71_spill] sm:$0xff] }
 0x172   :  { %v1507_v19 = vpop.permute.xlu1 %1506  ;;  %v1505_v2 = vpop.permute.xlu0 %1504  ;;  %v1244_v23 = vadd.f32 %v4683_v18, %v1091_v44  ;;  %v2019_v27 = vsel %vm375_vm2, %v2017_v17, %v2018_v15  ;;  %v2025_v54 = vrot.slane %v1972_v6, 3  ;;  %v2022_v28 = vrot.slane %v1970_v52, 3  ;;  %v2259_v15 = vld [vmem:[%s4463_s1 + $0x50] sm:$0xff]  ;;  %v4690_v44 = vld [vmem:[#allocation88_spill] sm:$0xff] }
 0x173   :  { %v1245_v29 = vadd.f32 %v4682_v30, %v1092_v35  ;;  %v4204_v25 = vadd.f32 %v1507_v19, %v1396_v61  ;;  %v4206_v10 = vadd.f32 %v1505_v2, %v1395_v50  ;;  %v1094_v36 = vadd.f32 %v4684_v60, %v997_v34  ;;  %v2261_v35 = vld [vmem:[%s4463_s1 + $0x48] sm:$0xff]  ;;  %v4693_v19 = vld [vmem:[#allocation72_spill] sm:$0xff] }
 0x174   :  { %1929 = vrot.lane.b32.xlu1 %v1898_v32, %s2307_s11  ;;  %1927 = vrot.lane.b32.xlu0 %v1896_v37, %s2307_s11  ;;  %v1093_v43 = vadd.f32 %v4685_v51, %v996_v22  ;;  %v1397_v59 = vadd.f32 %v3989_v42, %v1244_v23  ;;  %v999_v53 = vadd.f32 %v4686_v33, %v3985_v47  ;;  %v4687_v32 = vld [vmem:[#allocation70_spill] sm:$0xff]  ;;  %v4691_v50 = vld [vmem:[#allocation89_spill] sm:$0xff]  ;;  %v4694_v23 = vld [vmem:[#allocation8_spill] sm:$0xff] }
 0x175   :  { %v1398_v63 = vadd.f32 %v3987_v20, %v1245_v29  ;;  %v998_v1 = vadd.f32 %v4687_v32, %v3996_v55  ;;  %v1974_v17 = vmul.f32 %v2259_v15, %v4102_v11  ;;  %v2260_v20 = vld [vmem:[%s4463_s1 + $0x58] sm:$0x7]  ;;  %v1247_v9 = vadd.f32 %v4688_v48, %v1094_v36  ;;  %v4689_v47 = vld [vmem:[#allocation102_spill] sm:$0xff]  ;;  %v4698_v15 = vld [vmem:[#allocation68_spill] sm:$0xff] }
 0x176   :  { %v1511_v37 = vpop.permute.xlu1 %1510  ;;  %v1509_v58 = vpop.permute.xlu0 %1508  ;;  %v1975_v42 = vmul.f32 %v2260_v20, %v4102_v11  ;;  %v1246_v6 = vadd.f32 %v4689_v47, %v1093_v43  ;;  %v2026_v52 = vsel %vm375_vm2, %v2023_v0, %v2025_v54  ;;  %v2024_v4 = vsel %vm375_vm2, %v2022_v28, %v2023_v0  ;;  %v4695_v54 = vld [vmem:[#allocation103_spill] sm:$0xff]  ;;  %v2264_v43 = vld [vmem:[%s4463_s1 + $0x60] sm:$0xff]  ;;  %v4700_v48 = vld [vmem:[#allocation9_spill] sm:$0xff] }
 0x177   :  { %v4229_v57 = vadd.f32 %v1511_v37, %v1398_v63  ;;  %v4231_v55 = vadd.f32 %v1509_v58, %v1397_v59  ;;  %v1973_v45 = vmul.f32 %v2261_v35, %v4102_v11  ;;  %v1096_v61 = vadd.f32 %v4690_v44, %v999_v53  ;;  %v4697_v59 = vld [vmem:[#allocation91_spill] sm:$0xff]  ;;  %v2265_v35 = vld [vmem:[%s4463_s1 + $0x88] sm:$0x7]  ;;  %v4701_v44 = vld [vmem:[#allocation10_spill] sm:$0xff] }
 0x178   :  { %2054 = vrot.lane.b32.xlu1 %v2016_v21, %s2307_s11  ;;  %2052 = vrot.lane.b32.xlu0 %v2014_v13, %s2307_s11  ;;  %v1095_v14 = vadd.f32 %v4691_v50, %v998_v1  ;;  %v1400_v34 = vadd.f32 %v4016_v16, %v1247_v9  ;;  %v1399_v21 = vadd.f32 %v4018_v49, %v1246_v6  ;;  %v2028_v29 = vrot.slane %v1974_v17, 3  ;;  %v2263_v49 = vld [vmem:[%s4463_s1 + $0x70] sm:$0x7]  ;;  %v4699_v20 = vld [vmem:[#allocation67_spill] sm:$0xff] }
 0x179   :  { %v1001_v22 = vadd.f32 %v4692_v5, %v3999_v62  ;;  %v1000_v2 = vadd.f32 %v4693_v19, %v4002_v41  ;;  %v2030_v18 = vrot.slane %v1975_v42, 3  ;;  %v1249_v0 = vadd.f32 %v4694_v23, %v1096_v61  ;;  %v2262_v41 = vld [vmem:[%s4463_s1 + $0x68] sm:$0xff] }
 0x17a   :  { %v1515_v13 = vpop.permute.xlu1 %1514  ;;  %v1513_v30 = vpop.permute.xlu0 %1512  ;;  %v1248_v28 = vadd.f32 %v4695_v54, %v1095_v14  ;;  %v2027_v62 = vrot.slane %v1973_v45, 3  ;;  %v1977_v16 = vmul.f32 %v2262_v41, %v4102_v11  ;;  %v1978_v51 = vmul.f32 %v2263_v49, %v4102_v11 }
 0x17b   :  { %v4251_v60 = vadd.f32 %v1515_v13, %v1400_v34  ;;  %v4253_v36 = vadd.f32 %v1513_v30, %v1399_v21  ;;  %v1097_v33 = vadd.f32 %v4697_v59, %v1000_v2  ;;  %v1402_v53 = vadd.f32 %v4055_v24, %v1249_v0  ;;  %v4702_v30 = vld [vmem:[#allocation73_spill] sm:$0xff]  ;;  %v4703_v0 = vld [vmem:[#allocation11_spill] sm:$0xff] }
 0x17c   :  { %2058 = vrot.lane.b32.xlu1 %v2021_v3, %s2307_s11  ;;  %2056 = vrot.lane.b32.xlu0 %v2019_v27, %s2307_s11  ;;  %v1976_v3 = vmul.f32 %v2264_v43, %v4102_v11  ;;  %v4696_v27 = vld [vmem:[#allocation90_spill] sm:$0xff]  ;;  %v1401_v32 = vadd.f32 %v4057_v46, %v1248_v28  ;;  %v2031_v58 = vsel %vm375_vm2, %v2028_v29, %v2030_v18  ;;  %v2033_v46 = vrot.slane %v1977_v16, 3 }
 0x17d   :  { %v1098_v63 = vadd.f32 %v4696_v27, %v1001_v22  ;;  %v1980_v17 = vmul.f32 %v4698_v15, %v4102_v11  ;;  %v1250_v9 = vadd.f32 %v4700_v48, %v1097_v33  ;;  %v2029_v24 = vsel %vm375_vm2, %v2027_v62, %v2028_v29 }
 0x17e   :  { %v1519_v1 = vpop.permute.xlu1 %1518  ;;  %v1517_v37 = vpop.permute.xlu0 %1516  ;;  %v1981_v45 = vmul.f32 %v2265_v35, %v4102_v11  ;;  %v1979_v61 = vmul.f32 %v4701_v44, %v4102_v11  ;;  %v2035_v34 = vrot.slane %v1978_v51, 3  ;;  %v1982_v54 = vmul.f32 %v4703_v0, %v4102_v11 }
 0x17f   :  { %v1251_v42 = vadd.f32 %v4699_v20, %v1098_v63  ;;  %v4278_v47 = vadd.f32 %v1519_v1, %v1402_v53  ;;  %v4280_v6 = vadd.f32 %v1517_v37, %v1401_v32  ;;  %v1403_v14 = vadd.f32 %v4095_v31, %v1250_v9  ;;  %v2266_v31 = vld [vmem:[%s4463_s1 + $0xa0] sm:$0x7]  ;;  %v4704_v63 = vld [vmem:[#allocation77_spill] sm:$0xff] }
 0x180   :  { %2062 = vrot.lane.b32.xlu1 %v2026_v52, %s2307_s11  ;;  %2060 = vrot.lane.b32.xlu0 %v2024_v4, %s2307_s11  ;;  %v2032_v52 = vrot.slane %v1976_v3, 3  ;;  %v2038_v19 = vrot.slane %v1980_v17, 3  ;;  %v2040_v2 = vrot.slane %v1981_v45, 3  ;;  %v2037_v13 = vrot.slane %v1979_v61, 3 }
 0x181   :  { %v1404_v50 = vadd.f32 %v4093_v26, %v1251_v42  ;;  %v1983_v26 = vmul.f32 %v4702_v30, %v4102_v11  ;;  %v1984_v29 = vmul.f32 %v2266_v31, %v4102_v11  ;;  %v2036_v18 = vsel %vm375_vm2, %v2033_v46, %v2035_v34 }
 0x182   :  { %v1523_v21 = vpop.permute.xlu1 %1522  ;;  %v1521_v4 = vpop.permute.xlu0 %1520  ;;  %v2034_v23 = vsel %vm375_vm2, %v2032_v52, %v2033_v46  ;;  %v2041_v49 = vsel %vm375_vm2, %v2038_v19, %v2040_v2  ;;  %v2039_v51 = vsel %vm375_vm2, %v2037_v13, %v2038_v19  ;;  %v2042_v27 = vrot.slane %v1982_v54, 3 }
 0x183   :  { %v4293_v5 = vadd.f32 %v1523_v21, %v1404_v50  ;;  %v4295_v22 = vadd.f32 %v1521_v4, %v1403_v14  ;;  %v2043_v43 = vrot.slane %v1983_v26, 3  ;;  %v2045_v3 = vrot.slane %v1984_v29, 3 }
 0x184   :  { %2066 = vrot.lane.b32.xlu1 %v2031_v58, %s2307_s11  ;;  %2064 = vrot.lane.b32.xlu0 %v2029_v24, %s2307_s11  ;;  %v1986_v59 = vmul.f32 %v4704_v63, %v4102_v11  ;;  %v1985_v33 = vmul.f32 %v4111_v7, %v4102_v11 }
 0x185   :  { %v2046_v58 = vsel %vm375_vm2, %v2043_v43, %v2045_v3  ;;  %v2044_v15 = vsel %vm375_vm2, %v2042_v27, %v2043_v43 }
 0x186   :  { %v1527_v28 = vpop.permute.xlu1 %1526  ;;  %v1525_v62 = vpop.permute.xlu0 %1524  ;;  %v2048_v17 = vrot.slane %v1986_v59, 3  ;;  %v2047_v42 = vrot.slane %v1985_v33, 3 }
 0x187   :  { %v1559_v41 = vadd.f32 %v1527_v28, %v4132_v8  ;;  %v1558_v16 = vadd.f32 %v1525_v62, %v4134_v40  ;;  %v2267_v8 = vld [vmem:[%s4463_s1 + $0xb8] sm:$0x7]  ;;  %s2308_s1 = smov [#allocation5]  }
 0x188   :  { %2070 = vrot.lane.b32.xlu1 %v2036_v18, %s2307_s11  ;;  %2068 = vrot.lane.b32.xlu0 %v2034_v23, %s2307_s11  ;;  %v1987_v40 = vmul.f32 %v2267_v8, %v4102_v11  ;;  %v2049_v9 = vsel %vm375_vm2, %v2047_v42, %v2048_v17 }
 0x18a   :  { %v1596_v53 = vpop.permute.xlu1 %1595  ;;  %v1594_v32 = vpop.permute.xlu0 %1593  ;;  %v2050_v20 = vrot.slane %v1987_v40, 3 }
 0x18b   :  { %v4324_v1 = vadd.f32 %v1596_v53, %v4154_v38  ;;  %v4327_v37 = vadd.f32 %v1594_v32, %v4156_v39 }
 0x18c   :  { %2074 = vrot.lane.b32.xlu1 %v2041_v49, %s2307_s11  ;;  %2072 = vrot.lane.b32.xlu0 %v2039_v51, %s2307_s11  ;;  %v2051_v39 = vsel %vm375_vm2, %v2048_v17, %v2050_v20 }
 0x18e   :  { %v1600_v11 = vpop.permute.xlu1 %1599  ;;  %v1598_v7 = vpop.permute.xlu0 %1597 }
 0x18f   :  { %v4334_v48 = vadd.f32 %v1600_v11, %v4174_v56  ;;  %v4337_v38 = vadd.f32 %v1598_v7, %v4176_v12 }
 0x190   :  { %2078 = vrot.lane.b32.xlu1 %v2046_v58, %s2307_s11  ;;  %2076 = vrot.lane.b32.xlu0 %v2044_v15, %s2307_s11 }
 0x192   :  { %v1604_v24 = vpop.permute.xlu1 %1603  ;;  %v1602_v46 = vpop.permute.xlu0 %1601 }
 0x193   :  { %v4344_v35 = vadd.f32 %v1604_v24, %v4204_v25  ;;  %v4347_v45 = vadd.f32 %v1602_v46, %v4206_v10 }
 0x194   :  { %2082 = vrot.lane.b32.xlu1 %v2051_v39, %s2307_s11  ;;  %2080 = vrot.lane.b32.xlu0 %v2049_v9, %s2307_s11  ;;  %s2186_s11 = sshll.u32 %s2308_s1, 4  ;;  %s2187_s11 = int_to_ptr.vmem [resolvable:$true] %s2186_s11 }
 0x195   :  { %s2280_s6 = scalar_lea.vmem %s2187_s11, 2048  ;;  %p2285_p6 = scmp.lt.s32.totalorder %s2187_s11, %s2187_s11 }
 0x196   :  { %v1608_v56 = vpop.permute.xlu1 %1607  ;;  %v1606_v12 = vpop.permute.xlu0 %1605  ;;  %p2281_p5 = scmp.ne.s32.totalorder %s2187_s11, %s2280_s6  ;;  %p2286_p7 = scmp.lt.s32.totalorder %s2280_s6, %s2280_s6 }
 0x197   :  { %v4352_v44 = vadd.f32 %v1608_v56, %v4229_v57  ;;  %v4355_v61 = vadd.f32 %v1606_v12, %v4231_v55 }
 0x198   :  { %p2287_p8 = por %p2286_p7, %p2285_p6 }
 0x19a   :  { %v1612_v50 = vpop.permute.xlu1 %1611  ;;  %v1610_v14 = vpop.permute.xlu0 %1609  ;;  %p2288_p9 = pnand %p2287_p8, %p2281_p5 }
 0x19b   :  { %v4358_v25 = vadd.f32 %v1612_v50, %v4251_v60  ;;  %v4361_v10 = vadd.f32 %v1610_v14, %v4253_v36 }
 0x19e   :  { %v1616_v34 = vpop.permute.xlu1 %1615  ;;  %v1614_v52 = vpop.permute.xlu0 %1613 }
 0x19f   :  { %v4364_v21 = vadd.f32 %v1616_v34, %v4278_v47  ;;  %v4367_v4 = vadd.f32 %v1614_v52, %v4280_v6 }
 0x1a2   :  { %v1620_v57 = vpop.permute.xlu1 %1619  ;;  %v1618_v19 = vpop.permute.xlu0 %1617 }
 0x1a3   :  { %v4370_v55 = vadd.f32 %v1620_v57, %v4293_v5  ;;  %v4373_v2 = vadd.f32 %v1618_v19, %v4295_v22 }
 0x1a6   :  { %v1624_v60 = vpop.permute.xlu1 %1623  ;;  %v1622_v13 = vpop.permute.xlu0 %1621 }
 0x1a7   :  { %v4375_v36 = vadd.f32 %v1624_v60, %v1559_v41  ;;  %v4377_v30 = vadd.f32 %v1622_v13, %v1558_v16 }
 0x1aa   :  { %v1749_v26 = vpop.permute.xlu1 %1748  ;;  %v1747_v47 = vpop.permute.xlu0 %1746 }
 0x1ab   :  { %v1795_v11 = vadd.f32 %v1749_v26, %v4324_v1  ;;  %v1794_v7 = vadd.f32 %v1747_v47, %v4327_v37 }
 0x1ae   :  { %v1753_v31 = vpop.permute.xlu1 %1752  ;;  %v1751_v29 = vpop.permute.xlu0 %1750 }
 0x1af   :  { %v1797_v56 = vadd.f32 %v1753_v31, %v4334_v48  ;;  %v1796_v12 = vadd.f32 %v1751_v29, %v4337_v38 }
 0x1b2   :  { %v1757_v6 = vpop.permute.xlu1 %1756  ;;  %v1755_v18 = vpop.permute.xlu0 %1754 }
 0x1b3   :  { %v1799_v60 = vadd.f32 %v1757_v6, %v4344_v35  ;;  %v1798_v1 = vadd.f32 %v1755_v18, %v4347_v45 }
 0x1b6   :  { %v1761_v23 = vpop.permute.xlu1 %1760  ;;  %v1759_v0 = vpop.permute.xlu0 %1758 }
 0x1ba   :  { %v4379_v54 = vpop.permute.xlu1 %1764  ;;  %v4381_v5 = vpop.permute.xlu0 %1762 }
 0x1be   :  { %v4383_v22 = vpop.permute.xlu1 %1768  ;;  %v4385_v28 = vpop.permute.xlu0 %1766 }
 0x1c2   :  { %v4387_v62 = vpop.permute.xlu1 %1772  ;;  %v4389_v41 = vpop.permute.xlu0 %1770 }
 0x1c6   :  { %v4391_v16 = vpop.permute.xlu1 %1776  ;;  %v4393_v49 = vpop.permute.xlu0 %1774 }
 0x1ca   :  { %v1902_v51 = vpop.permute.xlu1 %1901  ;;  %v1900_v43 = vpop.permute.xlu0 %1899 }
 0x1cb   :  { %v1948_v39 = vadd.f32 %v1902_v51, %v1795_v11  ;;  %v1947_v9 = vadd.f32 %v1900_v43, %v1794_v7  ;;  %v1800_v7 = vadd.f32 %v1759_v0, %v4355_v61  ;;  %v1802_v61 = vadd.f32 %v4381_v5, %v4361_v10 }
 0x1cc   :  { %v1805_v10 = vadd.f32 %v4383_v22, %v4364_v21  ;;  %v1804_v5 = vadd.f32 %v4385_v28, %v4367_v4  ;;  %v1807_v4 = vadd.f32 %v4387_v62, %v4370_v55  ;;  %v1806_v28 = vadd.f32 %v4389_v41, %v4373_v2 }
 0x1cd   :  { %v1809_v2 = vadd.f32 %v4391_v16, %v4375_v36  ;;  %v1808_v41 = vadd.f32 %v4393_v49, %v4377_v30 }
 0x1ce   :  { %v1906_v3 = vpop.permute.xlu1 %1905  ;;  %v1904_v27 = vpop.permute.xlu0 %1903 }
 0x1cf   :  { %v1950_v34 = vadd.f32 %v1906_v3, %v1797_v56  ;;  %v1949_v52 = vadd.f32 %v1904_v27, %v1796_v12  ;;  %v1801_v27 = vadd.f32 %v1761_v23, %v4352_v44  ;;  %v1803_v44 = vadd.f32 %v4379_v54, %v4358_v25 }
 0x1d2   :  { %v1910_v63 = vpop.permute.xlu1 %1909  ;;  %v1908_v59 = vpop.permute.xlu0 %1907 }
 0x1d3   :  { %v1952_v11 = vadd.f32 %v1910_v63, %v1799_v60  ;;  %v1951_v48 = vadd.f32 %v1908_v59, %v1798_v1 }
 0x1d6   :  { %v1914_v8 = vpop.permute.xlu1 %1913  ;;  %v1912_v40 = vpop.permute.xlu0 %1911 }
 0x1d7   :  { %v1954_v59 = vadd.f32 %v1914_v8, %v1801_v27 }
 0x1da   :  { %v4395_v33 = vpop.permute.xlu1 %1917  ;;  %v4397_v53 = vpop.permute.xlu0 %1915 }
 0x1de   :  { %v4399_v32 = vpop.permute.xlu1 %1921  ;;  %v4401_v58 = vpop.permute.xlu0 %1919 }
 0x1e2   :  { %v4403_v15 = vpop.permute.xlu1 %1925  ;;  %v4405_v17 = vpop.permute.xlu0 %1923 }
 0x1e6   :  { %v4407_v20 = vpop.permute.xlu1 %1929  ;;  %v4409_v42 = vpop.permute.xlu0 %1927 }
 0x1ea   :  { %v2055_v24 = vpop.permute.xlu1 %2054  ;;  %v2053_v46 = vpop.permute.xlu0 %2052 }
 0x1eb   :  { %v2101_v50 = vadd.f32 %v2055_v24, %v1948_v39  ;;  %v2100_v14 = vadd.f32 %v2053_v46, %v1947_v9  ;;  %v1953_v9 = vadd.f32 %v1912_v40, %v1800_v7 }
 0x1ed   :  { %v2117_v57 = vmax.f32 %v2101_v50, 0.0  ;;  %v2116_v19 = vmax.f32 %v2100_v14, 0.0 }
 0x1ee   :  { %v2059_v13 = vpop.permute.xlu1 %2058  ;;  %v2057_v37 = vpop.permute.xlu0 %2056 }
 0x1ef   :  { %v2133_v26 = vmin.f32 %v2117_v57, 255.0  ;;  %v2132_v47 = vmin.f32 %v2116_v19, 255.0  ;;  %v2103_v51 = vadd.f32 %v2059_v13, %v1950_v34  ;;  %v2102_v43 = vadd.f32 %v2057_v37, %v1949_v52 }
 0x1f0   :  { %v1956_v34 = vadd.f32 %v4395_v33, %v1803_v44  ;;  %v1955_v52 = vadd.f32 %v4397_v53, %v1802_v61 }
 0x1f1   :  { %v2149_v38 = vfloor.f32 %v2133_v26  ;;  %v2148_v31 = vfloor.f32 %v2132_v47  ;;  %v2119_v29 = vmax.f32 %v2103_v51, 0.0  ;;  %v2118_v3 = vmax.f32 %v2102_v43, 0.0 }
 0x1f2   :  { %v2063_v35 = vpop.permute.xlu1 %2062  ;;  %v2061_v6 = vpop.permute.xlu0 %2060  ;;  %v1958_v26 = vadd.f32 %v4399_v32, %v1805_v10  ;;  %v1957_v47 = vadd.f32 %v4401_v58, %v1804_v5 }
 0x1f3   :  { %2166 = vst.msk [vmem:[#allocation5 + $0x8] sm:$0xff] %vm2164_vm3, %v2149_v38  ;;  %2165 = vst.msk [vmem:[#allocation5] sm:$0xff] %vm2164_vm3, %v2148_v31  ;;  %v2135_v45 = vmin.f32 %v2119_v29, 255.0  ;;  %v2134_v18 = vmin.f32 %v2118_v3, 255.0  ;;  %v2105_v39 = vadd.f32 %v2063_v35, %v1952_v11  ;;  %v2104_v63 = vadd.f32 %v2061_v6, %v1951_v48 }
 0x1f4   :  { %v1960_v29 = vadd.f32 %v4403_v15, %v1807_v4  ;;  %v1959_v3 = vadd.f32 %v4405_v17, %v1806_v28 }
 0x1f5   :  { %v2151_v24 = vfloor.f32 %v2135_v45  ;;  %v2150_v46 = vfloor.f32 %v2134_v18  ;;  %v2121_v56 = vmax.f32 %v2105_v39, 0.0  ;;  %v2120_v12 = vmax.f32 %v2104_v63, 0.0 }
 0x1f6   :  { %v2067_v23 = vpop.permute.xlu1 %2066  ;;  %v2065_v0 = vpop.permute.xlu0 %2064  ;;  %v1962_v39 = vadd.f32 %v4407_v20, %v1809_v2  ;;  %v1961_v63 = vadd.f32 %v4409_v42, %v1808_v41 }
 0x1f7   :  { %2168 = vst.msk [vmem:[#allocation5 + $0x18] sm:$0xff] %vm2164_vm3, %v2151_v24  ;;  %2167 = vst.msk [vmem:[#allocation5 + $0x10] sm:$0xff] %vm2164_vm3, %v2150_v46  ;;  %v2137_v50 = vmin.f32 %v2121_v56, 255.0  ;;  %v2136_v14 = vmin.f32 %v2120_v12, 255.0  ;;  %v2107_v8 = vadd.f32 %v2067_v23, %v1954_v59  ;;  %v2106_v40 = vadd.f32 %v2065_v0, %v1953_v9 }
 0x1f9   :  { %v2153_v57 = vfloor.f32 %v2137_v50  ;;  %v2152_v19 = vfloor.f32 %v2136_v14  ;;  %v2123_v25 = vmax.f32 %v2107_v8, 0.0  ;;  %v2122_v54 = vmax.f32 %v2106_v40, 0.0 }
 0x1fa   :  { %v2071_v60 = vpop.permute.xlu1 %2070  ;;  %v2069_v1 = vpop.permute.xlu0 %2068 }
 0x1fb   :  { %2170 = vst.msk [vmem:[#allocation5 + $0x28] sm:$0xff] %vm2164_vm3, %v2153_v57  ;;  %2169 = vst.msk [vmem:[#allocation5 + $0x20] sm:$0xff] %vm2164_vm3, %v2152_v19  ;;  %v2139_v13 = vmin.f32 %v2123_v25, 255.0  ;;  %v2138_v33 = vmin.f32 %v2122_v54, 255.0  ;;  %v2109_v37 = vadd.f32 %v2071_v60, %v1956_v34  ;;  %v2108_v53 = vadd.f32 %v2069_v1, %v1955_v52 }
 0x1fd   :  { %v2155_v51 = vfloor.f32 %v2139_v13  ;;  %v2154_v43 = vfloor.f32 %v2138_v33  ;;  %v2125_v21 = vmax.f32 %v2109_v37, 0.0  ;;  %v2124_v22 = vmax.f32 %v2108_v53, 0.0 }
 0x1fe   :  { %v2075_v11 = vpop.permute.xlu1 %2074  ;;  %v2073_v48 = vpop.permute.xlu0 %2072 }
 0x1ff   :  { %2172 = vst.msk [vmem:[#allocation5 + $0x38] sm:$0xff] %vm2164_vm3, %v2155_v51  ;;  %2171 = vst.msk [vmem:[#allocation5 + $0x30] sm:$0xff] %vm2164_vm3, %v2154_v43  ;;  %v2141_v38 = vmin.f32 %v2125_v21, 255.0  ;;  %v2140_v32 = vmin.f32 %v2124_v22, 255.0  ;;  %v2111_v31 = vadd.f32 %v2075_v11, %v1958_v26  ;;  %v2110_v58 = vadd.f32 %v2073_v48, %v1957_v47 }
 0x201   :  { %v2157_v27 = vfloor.f32 %v2141_v38  ;;  %v2156_v7 = vfloor.f32 %v2140_v32  ;;  %v2127_v55 = vmax.f32 %v2111_v31, 0.0  ;;  %v2126_v62 = vmax.f32 %v2110_v58, 0.0 }
 0x202   :  { %v2079_v35 = vpop.permute.xlu1 %2078  ;;  %v2077_v6 = vpop.permute.xlu0 %2076 }
 0x203   :  { %2174 = vst.msk [vmem:[#allocation5 + $0x48] sm:$0xff] %vm2164_vm3, %v2157_v27  ;;  %2173 = vst.msk [vmem:[#allocation5 + $0x40] sm:$0xff] %vm2164_vm3, %v2156_v7  ;;  %v2143_v45 = vmin.f32 %v2127_v55, 255.0  ;;  %v2142_v15 = vmin.f32 %v2126_v62, 255.0  ;;  %v2113_v18 = vadd.f32 %v2079_v35, %v1960_v29  ;;  %v2112_v17 = vadd.f32 %v2077_v6, %v1959_v3 }
 0x205   :  { %v2159_v59 = vfloor.f32 %v2143_v45  ;;  %v2158_v9 = vfloor.f32 %v2142_v15  ;;  %v2129_v36 = vmax.f32 %v2113_v18, 0.0  ;;  %v2128_v16 = vmax.f32 %v2112_v17, 0.0 }
 0x206   :  { %v2083_v24 = vpop.permute.xlu1 %2082  ;;  %v2081_v30 = vpop.permute.xlu0 %2080 }
 0x207   :  { %2176 = vst.msk [vmem:[#allocation5 + $0x58] sm:$0xff] %vm2164_vm3, %v2159_v59  ;;  %2175 = vst.msk [vmem:[#allocation5 + $0x50] sm:$0xff] %vm2164_vm3, %v2158_v9  ;;  %v2145_v49 = vmin.f32 %v2129_v36, 255.0  ;;  %v2144_v46 = vmin.f32 %v2128_v16, 255.0  ;;  %v2115_v56 = vadd.f32 %v2083_v24, %v1962_v39  ;;  %v2114_v12 = vadd.f32 %v2081_v30, %v1961_v63 }
 0x209   :  { %v2161_v44 = vfloor.f32 %v2145_v49  ;;  %v2160_v61 = vfloor.f32 %v2144_v46  ;;  %v2131_v23 = vmax.f32 %v2115_v56, 0.0  ;;  %v2130_v20 = vmax.f32 %v2114_v12, 0.0 }
 0x20b   :  { %2178 = vst.msk [vmem:[#allocation5 + $0x68] sm:$0xff] %vm2164_vm3, %v2161_v44  ;;  %2177 = vst.msk [vmem:[#allocation5 + $0x60] sm:$0xff] %vm2164_vm3, %v2160_v61  ;;  %v2147_v42 = vmin.f32 %v2131_v23, 255.0  ;;  %v2146_v0 = vmin.f32 %v2130_v20, 255.0 }
 0x20d   :  { %v2163_v50 = vfloor.f32 %v2147_v42  ;;  %v2162_v14 = vfloor.f32 %v2146_v0 }
 0x20f   :  { %2180 = vst.msk [vmem:[#allocation5 + $0x78] sm:$0xff] %vm2164_vm3, %v2163_v50  ;;  %2179 = vst.msk [vmem:[#allocation5 + $0x70] sm:$0xff] %vm2164_vm3, %v2162_v14 }
 0x210   :  { %2291 = shalt.err (!%p2288_p9)
}
 0x211   :  { %s2309_s7 = smov 128   ;;  %s2310_s8 = smov 8  }
 0x212   :  { %2192 = dma.vmem_to_hbm [thread:$0]  %s2187_s11, 2048, %s4464_s2, [#allocation3], %s2309_s7, %s2309_s7, %s2310_s8  }
 0x213   :  { %2302 = dma.done.wait [#allocation3], 2048  }
 0x214   :  { %2303 = vsyncadd [#allocation3], 4294965248 }
 0x215   :  { %2196 = vsyncpa [#allocation3], 1 }
 0x216   :  { %2197 = vsyncpa [#allocation4], 1 }

</bundles_post_ra>
